<compile_context>
chip_gen: v6e
topology: v6e:2x2x1
jax: 0.10.0
libtpu: 0.0.40
codegen_flags: <defaults>
</compile_context>

<pallas_src>
import jax
import jax.numpy as jnp
import numpy as np
from jax.experimental import pallas as pl
from jax.experimental.pallas import tpu as pltpu

# ---- problem sizes (small, consistent with the module) ----------------------
B, T, I = 8, 8, 16          # batch, seq_len, input_size
H = 32                      # hidden_size
L = 10                      # number of (Linear, BatchNorm1d) blocks
OUT = 1                     # output_size
BN_EPS = 1e-5

VMEM_SPEC = pl.BlockSpec(memory_space=pltpu.MemorySpace.VMEM)


# --------------------------- single fused kernel ------------------------------
def fused_kernel(x_ref, w_in_ref, lstm_b_ref, whh_ref, conv_b_ref,
                 wf_lstm_ref, wf_conv_ref, bf_ref,
                 wl_ref, bl_ref, wlast_ref, blast_ref, out_ref):
    TB, _ = x_ref.shape
    H_ = conv_b_ref.shape[1]
    B_ = out_ref.shape[0]
    T_ = TB // B_
    L_ = wl_ref.shape[0]

    # One whole-sequence input projection: LSTM x-gates for every step AND all
    # three conv taps in a single MXU pass.  x is laid out (T*B, I), so each
    # timestep is a contiguous, sublane-aligned block of B rows of `proj`.
    proj = jnp.dot(x_ref[...], w_in_ref[...],
                   preferred_element_type=jnp.float32)            # (T*B, 4H+3H)

    whh = whh_ref[...]                                            # (H, 4H), hoisted
    lstm_b = lstm_b_ref[...]                                      # (1, 4H), pre-scaled
    conv_bb = jnp.broadcast_to(conv_b_ref[...], (B_, H_))         # hoisted broadcast

    h = jnp.zeros((B_, H_), jnp.float32)
    c = jnp.zeros((B_, H_), jnp.float32)
    conv_max = jnp.zeros((B_, H_), jnp.float32)                   # ReLU >= 0, 0-init ok

    for t in range(T_):                      # static unroll: constant indices
        # ---- LSTM step: only the recurrent matmul lives in the loop ----------
        gx = proj[t * B_:(t + 1) * B_, 0:4 * H_] + lstm_b
        if t == 0:                           # h0 == 0 -> skip first recurrent dot
            gates = gx
        else:
            gates = gx + jnp.dot(h, whh, preferred_element_type=jnp.float32)
        # i/f/o columns were pre-scaled by 0.5, so ONE tanh over the full 4H
        # width yields both the tanh gate and (via 0.5*t+0.5) the sigmoids.
        th = jnp.tanh(gates)
        sg = 0.5 * th + 0.5
        i_g = sg[:, 0 * H_:1 * H_]           # PyTorch gate order i, f, g, o
        f_g = sg[:, 1 * H_:2 * H_]
        g_g = th[:, 2 * H_:3 * H_]
        o_g = sg[:, 3 * H_:4 * H_]
        if t == 0:                           # c0 == 0 -> skip first f*c product
            c = i_g * g_g
        else:
            c = f_g * c + i_g * g_g
        h = o_g * jnp.tanh(c)

        # ---- Conv1d(k=3, same pad) tap combine + ReLU + running max-pool -----
        acc = conv_bb + proj[t * B_:(t + 1) * B_, 5 * H_:6 * H_]          # w[1]·x[t]
        if t > 0:
            acc = acc + proj[(t - 1) * B_:t * B_, 4 * H_:5 * H_]          # w[0]·x[t-1]
        if t < T_ - 1:
            acc = acc + proj[(t + 1) * B_:(t + 2) * B_, 6 * H_:7 * H_]    # w[2]·x[t+1]
        conv_max = jnp.maximum(conv_max, jnp.maximum(acc, 0.0))

    # --- predictor MLP: feat never materialized, BN folded into weights -------
    z = jnp.tanh(jnp.dot(h, wf_lstm_ref[...], preferred_element_type=jnp.float32)
                 + jnp.dot(conv_max, wf_conv_ref[...], preferred_element_type=jnp.float32)
                 + bf_ref[...])
    for i in range(L_):                      # static unroll over the 10 blocks
        z = jnp.tanh(jnp.dot(z, wl_ref[i], preferred_element_type=jnp.float32)
                     + bl_ref[i])
    y = jnp.dot(z, wlast_ref[...], preferred_element_type=jnp.float32) + blast_ref[...]
    out_ref[...] = jax.nn.sigmoid(y)


def forward(x_bti, kp):
    Bsz, Tlen, Isz = x_bti.shape
    # Wrapper-side layout plumbing: (B, T, I) -> (T*B, I) so each timestep is a
    # contiguous, sublane-aligned B-row block inside the kernel.
    x_tbi = jnp.transpose(x_bti, (1, 0, 2)).reshape(Tlen * Bsz, Isz)
    return pl.pallas_call(
        fused_kernel,
        out_shape=jax.ShapeDtypeStruct((Bsz, OUT), jnp.float32),
        in_specs=[VMEM_SPEC] * 12,
        out_specs=VMEM_SPEC,
    )(x_tbi, kp["w_in"], kp["lstm_b"], kp["whh_t"], kp["conv_b"],
      kp["wf_lstm"], kp["wf_conv"], kp["bf"],
      kp["wl_f"], kp["bl_f"], kp["wlast_f"], kp["blast_f"])


# ------------------- one-time parameter fusion / BN folding ------------------
def prepare_kernel_params(p):
    sc, sh = p["sc"], p["sh"]                        # eval-mode BN affine (L,1,H)
    # Fold sigmoid(x) = 0.5*tanh(x/2)+0.5 into the i/f/o gate columns so the
    # kernel does a single tanh per step over the full 4H gate register.
    gate_scale = jnp.concatenate(
        [jnp.full((1, H), 0.5, jnp.float32),         # i
         jnp.full((1, H), 0.5, jnp.float32),         # f
         jnp.ones((1, H), jnp.float32),              # g (stays tanh)
         jnp.full((1, H), 0.5, jnp.float32)],        # o
        axis=1)
    return {
        # [Wih_t*scale | conv_w0 | conv_w1 | conv_w2] -> one input-projection matmul
        "w_in": jnp.concatenate(
            [p["wih_t"] * gate_scale,
             p["conv_w"][0], p["conv_w"][1], p["conv_w"][2]], axis=1),
        "lstm_b": p["lstm_b"] * gate_scale,
        "whh_t": p["whh_t"] * gate_scale,
        "conv_b": p["conv_b"],
        "wf_lstm": p["wf"][:H, :],                   # first_layer split: no concat
        "wf_conv": p["wf"][H:, :],
        "bf": p["bf"],
        "wl_f": p["wl"] * sc,                        # fold BN scale into Linear
        "bl_f": p["bl"] * sc + sh,
        "wlast_f": p["wlast"] * p["sclast"],
        "blast_f": p["blast"] * p["sclast"] + p["shlast"],
    }


# ----------------------------- pure-JAX reference ----------------------------
def reference_forward(x, p):
    # LSTM extractor -> last hidden state
    h = jnp.zeros((B, H), jnp.float32)
    c = jnp.zeros((B, H), jnp.float32)
    for t in range(T):
        gates = x[:, t, :] @ p["wih_t"] + h @ p["whh_t"] + p["lstm_b"]
        i_g = jax.nn.sigmoid(gates[:, 0 * H:1 * H])
        f_g = jax.nn.sigmoid(gates[:, 1 * H:2 * H])
        g_g = jnp.tanh(gates[:, 2 * H:3 * H])
        o_g = jax.nn.sigmoid(gates[:, 3 * H:4 * H])
        c = f_g * c + i_g * g_g
        h = o_g * jnp.tanh(c)
    lstm_out = h
    # Conv extractor: Conv1d(k=3, pad=1) + ReLU + global max-pool over time
    conv_out = jnp.zeros((B, H), jnp.float32)
    for t in range(T):
        y = jnp.broadcast_to(p["conv_b"], (B, H))
        for k in range(3):
            idx = t + k - 1
            if 0 <= idx < T:
                y = y + x[:, idx, :] @ p["conv_w"][k]
        conv_out = jnp.maximum(conv_out, jnp.maximum(y, 0.0))
    # Predictor MLP (eval-mode BN applied un-folded; dropout = identity)
    feat = jnp.concatenate([lstm_out, conv_out], axis=1)
    z = jnp.tanh(feat @ p["wf"] + p["bf"])
    for i in range(L):
        z = jnp.tanh((z @ p["wl"][i] + p["bl"][i]) * p["sc"][i] + p["sh"][i])
    y = (z @ p["wlast"] + p["blast"]) * p["sclast"] + p["shlast"]
    return jax.nn.sigmoid(y)


# ------------------------------ parameter init -------------------------------
def init_params(key):
    ks = jax.random.split(key, 12)

    def xavier(k, shape):
        fan_in, fan_out = shape[-2], shape[-1]
        bound = float(np.sqrt(6.0 / (fan_in + fan_out)))
        return jax.random.uniform(k, shape, jnp.float32, -bound, bound)

    lstm_bound = 1.0 / np.sqrt(H)
    wih_t = jax.random.uniform(ks[0], (I, 4 * H), jnp.float32, -lstm_bound, lstm_bound)
    whh_t = jax.random.uniform(ks[1], (H, 4 * H), jnp.float32, -lstm_bound, lstm_bound)
    lstm_b = jax.random.uniform(ks[2], (1, 4 * H), jnp.float32, -lstm_bound, lstm_bound)

    conv_w = xavier(ks[3], (3, I, H))
    conv_b = jax.random.uniform(ks[4], (1, H), jnp.float32, -0.1, 0.1)

    # BatchNorm1d defaults: gamma=1, beta=0, running_mean=0, running_var=1
    gamma = jnp.ones((L, 1, H), jnp.float32)
    beta = jnp.zeros((L, 1, H), jnp.float32)
    run_mean = jnp.zeros((L, 1, H), jnp.float32)
    run_var = jnp.ones((L, 1, H), jnp.float32)
    sc = gamma / jnp.sqrt(run_var + BN_EPS)
    sh = beta - run_mean * sc

    sclast = jnp.ones((1, OUT), jnp.float32) / jnp.sqrt(1.0 + BN_EPS)
    shlast = jnp.zeros((1, OUT), jnp.float32)

    return {
        "wih_t": wih_t, "whh_t": whh_t, "lstm_b": lstm_b,
        "conv_w": conv_w, "conv_b": conv_b,
        "wf": xavier(ks[5], (2 * H, H)),
        "bf": jax.random.uniform(ks[6], (1, H), jnp.float32, -0.1, 0.1),
        "wl": xavier(ks[7], (L, H, H)),
        "bl": jax.random.uniform(ks[8], (L, 1, H), jnp.float32, -0.1, 0.1),
        "sc": sc, "sh": sh,
        "wlast": xavier(ks[9], (H, OUT)),
        "blast": jax.random.uniform(ks[10], (1, OUT), jnp.float32, -0.1, 0.1),
        "sclast": sclast, "shlast": shlast,
    }


if __name__ == "__main__":
    key = jax.random.PRNGKey(0)
    k_x, k_p = jax.random.split(key)
    x = jax.random.normal(k_x, (B, T, I), jnp.float32)   # input_data: (batch, seq, features)
    params = init_params(k_p)
    kparams = prepare_kernel_params(params)

    out = jax.block_until_ready(forward(x, kparams))
    ref = jax.block_until_ready(reference_forward(x, params))

    assert out.shape == (B, OUT), out.shape
    np.testing.assert_allclose(np.asarray(out), np.asarray(ref), rtol=1e-4, atol=1e-5)
    print("KERNEL_OK")
</pallas_src>

<mosaic_0001>
module attributes {stable_mosaic.version = 11 : i64} {
  func.func @fused_kernel(%arg0: memref<64x16xf32, #tpu.memory_space<vmem>>, %arg1: memref<16x224xf32, #tpu.memory_space<vmem>>, %arg2: memref<1x128xf32, #tpu.memory_space<vmem>>, %arg3: memref<32x128xf32, #tpu.memory_space<vmem>>, %arg4: memref<1x32xf32, #tpu.memory_space<vmem>>, %arg5: memref<32x32xf32, #tpu.memory_space<vmem>>, %arg6: memref<32x32xf32, #tpu.memory_space<vmem>>, %arg7: memref<1x32xf32, #tpu.memory_space<vmem>>, %arg8: memref<10x32x32xf32, #tpu.memory_space<vmem>>, %arg9: memref<10x1x32xf32, #tpu.memory_space<vmem>>, %arg10: memref<32x1xf32, #tpu.memory_space<vmem>>, %arg11: memref<1x1xf32, #tpu.memory_space<vmem>>, %arg12: memref<8x1xf32, #tpu.memory_space<vmem>>) attributes {dimension_semantics = [], scalar_prefetch = 0 : i64, scratch_operands = 0 : i64, tpu.core_type = #tpu.core_type<tc>} {
    %c0 = arith.constant 0 : index
    %c0_0 = arith.constant 0 : index
    %0 = vector.load %arg0[%c0, %c0_0] : memref<64x16xf32, #tpu.memory_space<vmem>>, vector<64x16xf32>
    %c0_1 = arith.constant 0 : index
    %c0_2 = arith.constant 0 : index
    %1 = vector.load %arg1[%c0_1, %c0_2] : memref<16x224xf32, #tpu.memory_space<vmem>>, vector<16x224xf32>
    %cst = arith.constant dense<0.000000e+00> : vector<64x224xf32>
    %2 = tpu.matmul %0, %1, %cst {dimension_numbers = #tpu.dot_dimension_numbers<[1], [0], [0], [1], [0, 0, 1, 1], [], []>} : vector<64x16xf32>, vector<16x224xf32>, vector<64x224xf32> -> vector<64x224xf32>
    %c0_3 = arith.constant 0 : index
    %c0_4 = arith.constant 0 : index
    %3 = vector.load %arg3[%c0_3, %c0_4] : memref<32x128xf32, #tpu.memory_space<vmem>>, vector<32x128xf32>
    %c0_5 = arith.constant 0 : index
    %c0_6 = arith.constant 0 : index
    %4 = vector.load %arg2[%c0_5, %c0_6] : memref<1x128xf32, #tpu.memory_space<vmem>>, vector<1x128xf32>
    %c0_7 = arith.constant 0 : index
    %c0_8 = arith.constant 0 : index
    %5 = vector.load %arg4[%c0_7, %c0_8] : memref<1x32xf32, #tpu.memory_space<vmem>>, vector<1x32xf32>
    %6 = vector.shape_cast %5 : vector<1x32xf32> to vector<1x32xf32>
    %7 = vector.broadcast %6 : vector<1x32xf32> to vector<8x32xf32>
    %cst_9 = arith.constant 0.000000e+00 : f32
    %8 = vector.broadcast %cst_9 : f32 to vector<8x32xf32>
    %9 = vector.extract_strided_slice %2 {offsets = [0, 0], sizes = [8, 128], strides = [1, 1]} : vector<64x224xf32> to vector<8x128xf32>
    %10 = vector.broadcast %4 : vector<1x128xf32> to vector<8x128xf32>
    %11 = arith.addf %9, %10 : vector<8x128xf32>
    %12 = math.tanh %11 : vector<8x128xf32>
    %cst_10 = arith.constant 5.000000e-01 : f32
    %13 = vector.broadcast %cst_10 : f32 to vector<8x128xf32>
    %14 = arith.mulf %13, %12 : vector<8x128xf32>
    %cst_11 = arith.constant 5.000000e-01 : f32
    %15 = vector.broadcast %cst_11 : f32 to vector<8x128xf32>
    %16 = arith.addf %14, %15 : vector<8x128xf32>
    %17 = vector.extract_strided_slice %16 {offsets = [0, 0], sizes = [8, 32], strides = [1, 1]} : vector<8x128xf32> to vector<8x32xf32>
    %18 = vector.extract_strided_slice %12 {offsets = [0, 64], sizes = [8, 32], strides = [1, 1]} : vector<8x128xf32> to vector<8x32xf32>
    %19 = vector.extract_strided_slice %16 {offsets = [0, 96], sizes = [8, 32], strides = [1, 1]} : vector<8x128xf32> to vector<8x32xf32>
    %20 = arith.mulf %17, %18 : vector<8x32xf32>
    %21 = math.tanh %20 : vector<8x32xf32>
    %22 = arith.mulf %19, %21 : vector<8x32xf32>
    %23 = vector.extract_strided_slice %2 {offsets = [0, 160], sizes = [8, 32], strides = [1, 1]} : vector<64x224xf32> to vector<8x32xf32>
    %24 = arith.addf %7, %23 : vector<8x32xf32>
    %25 = vector.extract_strided_slice %2 {offsets = [8, 192], sizes = [8, 32], strides = [1, 1]} : vector<64x224xf32> to vector<8x32xf32>
    %26 = arith.addf %24, %25 : vector<8x32xf32>
    %cst_12 = arith.constant 0.000000e+00 : f32
    %27 = vector.broadcast %cst_12 : f32 to vector<8x32xf32>
    %28 = arith.maximumf %26, %27 : vector<8x32xf32>
    %29 = arith.maximumf %8, %28 : vector<8x32xf32>
    %30 = vector.extract_strided_slice %2 {offsets = [8, 0], sizes = [8, 128], strides = [1, 1]} : vector<64x224xf32> to vector<8x128xf32>
    %31 = vector.broadcast %4 : vector<1x128xf32> to vector<8x128xf32>
    %32 = arith.addf %30, %31 : vector<8x128xf32>
    %cst_13 = arith.constant dense<0.000000e+00> : vector<8x128xf32>
    %33 = tpu.matmul %22, %3, %cst_13 {dimension_numbers = #tpu.dot_dimension_numbers<[1], [0], [0], [1], [0, 0, 1, 1], [], []>} : vector<8x32xf32>, vector<32x128xf32>, vector<8x128xf32> -> vector<8x128xf32>
    %34 = arith.addf %32, %33 : vector<8x128xf32>
    %35 = math.tanh %34 : vector<8x128xf32>
    %cst_14 = arith.constant 5.000000e-01 : f32
    %36 = vector.broadcast %cst_14 : f32 to vector<8x128xf32>
    %37 = arith.mulf %36, %35 : vector<8x128xf32>
    %cst_15 = arith.constant 5.000000e-01 : f32
    %38 = vector.broadcast %cst_15 : f32 to vector<8x128xf32>
    %39 = arith.addf %37, %38 : vector<8x128xf32>
    %40 = vector.extract_strided_slice %39 {offsets = [0, 0], sizes = [8, 32], strides = [1, 1]} : vector<8x128xf32> to vector<8x32xf32>
    %41 = vector.extract_strided_slice %39 {offsets = [0, 32], sizes = [8, 32], strides = [1, 1]} : vector<8x128xf32> to vector<8x32xf32>
    %42 = vector.extract_strided_slice %35 {offsets = [0, 64], sizes = [8, 32], strides = [1, 1]} : vector<8x128xf32> to vector<8x32xf32>
    %43 = vector.extract_strided_slice %39 {offsets = [0, 96], sizes = [8, 32], strides = [1, 1]} : vector<8x128xf32> to vector<8x32xf32>
    %44 = arith.mulf %41, %20 : vector<8x32xf32>
    %45 = arith.mulf %40, %42 : vector<8x32xf32>
    %46 = arith.addf %44, %45 : vector<8x32xf32>
    %47 = math.tanh %46 : vector<8x32xf32>
    %48 = arith.mulf %43, %47 : vector<8x32xf32>
    %49 = vector.extract_strided_slice %2 {offsets = [8, 160], sizes = [8, 32], strides = [1, 1]} : vector<64x224xf32> to vector<8x32xf32>
    %50 = arith.addf %7, %49 : vector<8x32xf32>
    %51 = vector.extract_strided_slice %2 {offsets = [0, 128], sizes = [8, 32], strides = [1, 1]} : vector<64x224xf32> to vector<8x32xf32>
    %52 = arith.addf %50, %51 : vector<8x32xf32>
    %53 = vector.extract_strided_slice %2 {offsets = [16, 192], sizes = [8, 32], strides = [1, 1]} : vector<64x224xf32> to vector<8x32xf32>
    %54 = arith.addf %52, %53 : vector<8x32xf32>
    %cst_16 = arith.constant 0.000000e+00 : f32
    %55 = vector.broadcast %cst_16 : f32 to vector<8x32xf32>
    %56 = arith.maximumf %54, %55 : vector<8x32xf32>
    %57 = arith.maximumf %29, %56 : vector<8x32xf32>
    %58 = vector.extract_strided_slice %2 {offsets = [16, 0], sizes = [8, 128], strides = [1, 1]} : vector<64x224xf32> to vector<8x128xf32>
    %59 = vector.broadcast %4 : vector<1x128xf32> to vector<8x128xf32>
    %60 = arith.addf %58, %59 : vector<8x128xf32>
    %cst_17 = arith.constant dense<0.000000e+00> : vector<8x128xf32>
    %61 = tpu.matmul %48, %3, %cst_17 {dimension_numbers = #tpu.dot_dimension_numbers<[1], [0], [0], [1], [0, 0, 1, 1], [], []>} : vector<8x32xf32>, vector<32x128xf32>, vector<8x128xf32> -> vector<8x128xf32>
    %62 = arith.addf %60, %61 : vector<8x128xf32>
    %63 = math.tanh %62 : vector<8x128xf32>
    %cst_18 = arith.constant 5.000000e-01 : f32
    %64 = vector.broadcast %cst_18 : f32 to vector<8x128xf32>
    %65 = arith.mulf %64, %63 : vector<8x128xf32>
    %cst_19 = arith.constant 5.000000e-01 : f32
    %66 = vector.broadcast %cst_19 : f32 to vector<8x128xf32>
    %67 = arith.addf %65, %66 : vector<8x128xf32>
    %68 = vector.extract_strided_slice %67 {offsets = [0, 0], sizes = [8, 32], strides = [1, 1]} : vector<8x128xf32> to vector<8x32xf32>
    %69 = vector.extract_strided_slice %67 {offsets = [0, 32], sizes = [8, 32], strides = [1, 1]} : vector<8x128xf32> to vector<8x32xf32>
    %70 = vector.extract_strided_slice %63 {offsets = [0, 64], sizes = [8, 32], strides = [1, 1]} : vector<8x128xf32> to vector<8x32xf32>
    %71 = vector.extract_strided_slice %67 {offsets = [0, 96], sizes = [8, 32], strides = [1, 1]} : vector<8x128xf32> to vector<8x32xf32>
    %72 = arith.mulf %69, %46 : vector<8x32xf32>
    %73 = arith.mulf %68, %70 : vector<8x32xf32>
    %74 = arith.addf %72, %73 : vector<8x32xf32>
    %75 = math.tanh %74 : vector<8x32xf32>
    %76 = arith.mulf %71, %75 : vector<8x32xf32>
    %77 = vector.extract_strided_slice %2 {offsets = [16, 160], sizes = [8, 32], strides = [1, 1]} : vector<64x224xf32> to vector<8x32xf32>
    %78 = arith.addf %7, %77 : vector<8x32xf32>
    %79 = vector.extract_strided_slice %2 {offsets = [8, 128], sizes = [8, 32], strides = [1, 1]} : vector<64x224xf32> to vector<8x32xf32>
    %80 = arith.addf %78, %79 : vector<8x32xf32>
    %81 = vector.extract_strided_slice %2 {offsets = [24, 192], sizes = [8, 32], strides = [1, 1]} : vector<64x224xf32> to vector<8x32xf32>
    %82 = arith.addf %80, %81 : vector<8x32xf32>
    %cst_20 = arith.constant 0.000000e+00 : f32
    %83 = vector.broadcast %cst_20 : f32 to vector<8x32xf32>
    %84 = arith.maximumf %82, %83 : vector<8x32xf32>
    %85 = arith.maximumf %57, %84 : vector<8x32xf32>
    %86 = vector.extract_strided_slice %2 {offsets = [24, 0], sizes = [8, 128], strides = [1, 1]} : vector<64x224xf32> to vector<8x128xf32>
    %87 = vector.broadcast %4 : vector<1x128xf32> to vector<8x128xf32>
    %88 = arith.addf %86, %87 : vector<8x128xf32>
    %cst_21 = arith.constant dense<0.000000e+00> : vector<8x128xf32>
    %89 = tpu.matmul %76, %3, %cst_21 {dimension_numbers = #tpu.dot_dimension_numbers<[1], [0], [0], [1], [0, 0, 1, 1], [], []>} : vector<8x32xf32>, vector<32x128xf32>, vector<8x128xf32> -> vector<8x128xf32>
    %90 = arith.addf %88, %89 : vector<8x128xf32>
    %91 = math.tanh %90 : vector<8x128xf32>
    %cst_22 = arith.constant 5.000000e-01 : f32
    %92 = vector.broadcast %cst_22 : f32 to vector<8x128xf32>
    %93 = arith.mulf %92, %91 : vector<8x128xf32>
    %cst_23 = arith.constant 5.000000e-01 : f32
    %94 = vector.broadcast %cst_23 : f32 to vector<8x128xf32>
    %95 = arith.addf %93, %94 : vector<8x128xf32>
    %96 = vector.extract_strided_slice %95 {offsets = [0, 0], sizes = [8, 32], strides = [1, 1]} : vector<8x128xf32> to vector<8x32xf32>
    %97 = vector.extract_strided_slice %95 {offsets = [0, 32], sizes = [8, 32], strides = [1, 1]} : vector<8x128xf32> to vector<8x32xf32>
    %98 = vector.extract_strided_slice %91 {offsets = [0, 64], sizes = [8, 32], strides = [1, 1]} : vector<8x128xf32> to vector<8x32xf32>
    %99 = vector.extract_strided_slice %95 {offsets = [0, 96], sizes = [8, 32], strides = [1, 1]} : vector<8x128xf32> to vector<8x32xf32>
    %100 = arith.mulf %97, %74 : vector<8x32xf32>
    %101 = arith.mulf %96, %98 : vector<8x32xf32>
    %102 = arith.addf %100, %101 : vector<8x32xf32>
    %103 = math.tanh %102 : vector<8x32xf32>
    %104 = arith.mulf %99, %103 : vector<8x32xf32>
    %105 = vector.extract_strided_slice %2 {offsets = [24, 160], sizes = [8, 32], strides = [1, 1]} : vector<64x224xf32> to vector<8x32xf32>
    %106 = arith.addf %7, %105 : vector<8x32xf32>
    %107 = vector.extract_strided_slice %2 {offsets = [16, 128], sizes = [8, 32], strides = [1, 1]} : vector<64x224xf32> to vector<8x32xf32>
    %108 = arith.addf %106, %107 : vector<8x32xf32>
    %109 = vector.extract_strided_slice %2 {offsets = [32, 192], sizes = [8, 32], strides = [1, 1]} : vector<64x224xf32> to vector<8x32xf32>
    %110 = arith.addf %108, %109 : vector<8x32xf32>
    %cst_24 = arith.constant 0.000000e+00 : f32
    %111 = vector.broadcast %cst_24 : f32 to vector<8x32xf32>
    %112 = arith.maximumf %110, %111 : vector<8x32xf32>
    %113 = arith.maximumf %85, %112 : vector<8x32xf32>
    %114 = vector.extract_strided_slice %2 {offsets = [32, 0], sizes = [8, 128], strides = [1, 1]} : vector<64x224xf32> to vector<8x128xf32>
    %115 = vector.broadcast %4 : vector<1x128xf32> to vector<8x128xf32>
    %116 = arith.addf %114, %115 : vector<8x128xf32>
    %cst_25 = arith.constant dense<0.000000e+00> : vector<8x128xf32>
    %117 = tpu.matmul %104, %3, %cst_25 {dimension_numbers = #tpu.dot_dimension_numbers<[1], [0], [0], [1], [0, 0, 1, 1], [], []>} : vector<8x32xf32>, vector<32x128xf32>, vector<8x128xf32> -> vector<8x128xf32>
    %118 = arith.addf %116, %117 : vector<8x128xf32>
    %119 = math.tanh %118 : vector<8x128xf32>
    %cst_26 = arith.constant 5.000000e-01 : f32
    %120 = vector.broadcast %cst_26 : f32 to vector<8x128xf32>
    %121 = arith.mulf %120, %119 : vector<8x128xf32>
    %cst_27 = arith.constant 5.000000e-01 : f32
    %122 = vector.broadcast %cst_27 : f32 to vector<8x128xf32>
    %123 = arith.addf %121, %122 : vector<8x128xf32>
    %124 = vector.extract_strided_slice %123 {offsets = [0, 0], sizes = [8, 32], strides = [1, 1]} : vector<8x128xf32> to vector<8x32xf32>
    %125 = vector.extract_strided_slice %123 {offsets = [0, 32], sizes = [8, 32], strides = [1, 1]} : vector<8x128xf32> to vector<8x32xf32>
    %126 = vector.extract_strided_slice %119 {offsets = [0, 64], sizes = [8, 32], strides = [1, 1]} : vector<8x128xf32> to vector<8x32xf32>
    %127 = vector.extract_strided_slice %123 {offsets = [0, 96], sizes = [8, 32], strides = [1, 1]} : vector<8x128xf32> to vector<8x32xf32>
    %128 = arith.mulf %125, %102 : vector<8x32xf32>
    %129 = arith.mulf %124, %126 : vector<8x32xf32>
    %130 = arith.addf %128, %129 : vector<8x32xf32>
    %131 = math.tanh %130 : vector<8x32xf32>
    %132 = arith.mulf %127, %131 : vector<8x32xf32>
    %133 = vector.extract_strided_slice %2 {offsets = [32, 160], sizes = [8, 32], strides = [1, 1]} : vector<64x224xf32> to vector<8x32xf32>
    %134 = arith.addf %7, %133 : vector<8x32xf32>
    %135 = vector.extract_strided_slice %2 {offsets = [24, 128], sizes = [8, 32], strides = [1, 1]} : vector<64x224xf32> to vector<8x32xf32>
    %136 = arith.addf %134, %135 : vector<8x32xf32>
    %137 = vector.extract_strided_slice %2 {offsets = [40, 192], sizes = [8, 32], strides = [1, 1]} : vector<64x224xf32> to vector<8x32xf32>
    %138 = arith.addf %136, %137 : vector<8x32xf32>
    %cst_28 = arith.constant 0.000000e+00 : f32
    %139 = vector.broadcast %cst_28 : f32 to vector<8x32xf32>
    %140 = arith.maximumf %138, %139 : vector<8x32xf32>
    %141 = arith.maximumf %113, %140 : vector<8x32xf32>
    %142 = vector.extract_strided_slice %2 {offsets = [40, 0], sizes = [8, 128], strides = [1, 1]} : vector<64x224xf32> to vector<8x128xf32>
    %143 = vector.broadcast %4 : vector<1x128xf32> to vector<8x128xf32>
    %144 = arith.addf %142, %143 : vector<8x128xf32>
    %cst_29 = arith.constant dense<0.000000e+00> : vector<8x128xf32>
    %145 = tpu.matmul %132, %3, %cst_29 {dimension_numbers = #tpu.dot_dimension_numbers<[1], [0], [0], [1], [0, 0, 1, 1], [], []>} : vector<8x32xf32>, vector<32x128xf32>, vector<8x128xf32> -> vector<8x128xf32>
    %146 = arith.addf %144, %145 : vector<8x128xf32>
    %147 = math.tanh %146 : vector<8x128xf32>
    %cst_30 = arith.constant 5.000000e-01 : f32
    %148 = vector.broadcast %cst_30 : f32 to vector<8x128xf32>
    %149 = arith.mulf %148, %147 : vector<8x128xf32>
    %cst_31 = arith.constant 5.000000e-01 : f32
    %150 = vector.broadcast %cst_31 : f32 to vector<8x128xf32>
    %151 = arith.addf %149, %150 : vector<8x128xf32>
    %152 = vector.extract_strided_slice %151 {offsets = [0, 0], sizes = [8, 32], strides = [1, 1]} : vector<8x128xf32> to vector<8x32xf32>
    %153 = vector.extract_strided_slice %151 {offsets = [0, 32], sizes = [8, 32], strides = [1, 1]} : vector<8x128xf32> to vector<8x32xf32>
    %154 = vector.extract_strided_slice %147 {offsets = [0, 64], sizes = [8, 32], strides = [1, 1]} : vector<8x128xf32> to vector<8x32xf32>
    %155 = vector.extract_strided_slice %151 {offsets = [0, 96], sizes = [8, 32], strides = [1, 1]} : vector<8x128xf32> to vector<8x32xf32>
    %156 = arith.mulf %153, %130 : vector<8x32xf32>
    %157 = arith.mulf %152, %154 : vector<8x32xf32>
    %158 = arith.addf %156, %157 : vector<8x32xf32>
    %159 = math.tanh %158 : vector<8x32xf32>
    %160 = arith.mulf %155, %159 : vector<8x32xf32>
    %161 = vector.extract_strided_slice %2 {offsets = [40, 160], sizes = [8, 32], strides = [1, 1]} : vector<64x224xf32> to vector<8x32xf32>
    %162 = arith.addf %7, %161 : vector<8x32xf32>
    %163 = vector.extract_strided_slice %2 {offsets = [32, 128], sizes = [8, 32], strides = [1, 1]} : vector<64x224xf32> to vector<8x32xf32>
    %164 = arith.addf %162, %163 : vector<8x32xf32>
    %165 = vector.extract_strided_slice %2 {offsets = [48, 192], sizes = [8, 32], strides = [1, 1]} : vector<64x224xf32> to vector<8x32xf32>
    %166 = arith.addf %164, %165 : vector<8x32xf32>
    %cst_32 = arith.constant 0.000000e+00 : f32
    %167 = vector.broadcast %cst_32 : f32 to vector<8x32xf32>
    %168 = arith.maximumf %166, %167 : vector<8x32xf32>
    %169 = arith.maximumf %141, %168 : vector<8x32xf32>
    %170 = vector.extract_strided_slice %2 {offsets = [48, 0], sizes = [8, 128], strides = [1, 1]} : vector<64x224xf32> to vector<8x128xf32>
    %171 = vector.broadcast %4 : vector<1x128xf32> to vector<8x128xf32>
    %172 = arith.addf %170, %171 : vector<8x128xf32>
    %cst_33 = arith.constant dense<0.000000e+00> : vector<8x128xf32>
    %173 = tpu.matmul %160, %3, %cst_33 {dimension_numbers = #tpu.dot_dimension_numbers<[1], [0], [0], [1], [0, 0, 1, 1], [], []>} : vector<8x32xf32>, vector<32x128xf32>, vector<8x128xf32> -> vector<8x128xf32>
    %174 = arith.addf %172, %173 : vector<8x128xf32>
    %175 = math.tanh %174 : vector<8x128xf32>
    %cst_34 = arith.constant 5.000000e-01 : f32
    %176 = vector.broadcast %cst_34 : f32 to vector<8x128xf32>
    %177 = arith.mulf %176, %175 : vector<8x128xf32>
    %cst_35 = arith.constant 5.000000e-01 : f32
    %178 = vector.broadcast %cst_35 : f32 to vector<8x128xf32>
    %179 = arith.addf %177, %178 : vector<8x128xf32>
    %180 = vector.extract_strided_slice %179 {offsets = [0, 0], sizes = [8, 32], strides = [1, 1]} : vector<8x128xf32> to vector<8x32xf32>
    %181 = vector.extract_strided_slice %179 {offsets = [0, 32], sizes = [8, 32], strides = [1, 1]} : vector<8x128xf32> to vector<8x32xf32>
    %182 = vector.extract_strided_slice %175 {offsets = [0, 64], sizes = [8, 32], strides = [1, 1]} : vector<8x128xf32> to vector<8x32xf32>
    %183 = vector.extract_strided_slice %179 {offsets = [0, 96], sizes = [8, 32], strides = [1, 1]} : vector<8x128xf32> to vector<8x32xf32>
    %184 = arith.mulf %181, %158 : vector<8x32xf32>
    %185 = arith.mulf %180, %182 : vector<8x32xf32>
    %186 = arith.addf %184, %185 : vector<8x32xf32>
    %187 = math.tanh %186 : vector<8x32xf32>
    %188 = arith.mulf %183, %187 : vector<8x32xf32>
    %189 = vector.extract_strided_slice %2 {offsets = [48, 160], sizes = [8, 32], strides = [1, 1]} : vector<64x224xf32> to vector<8x32xf32>
    %190 = arith.addf %7, %189 : vector<8x32xf32>
    %191 = vector.extract_strided_slice %2 {offsets = [40, 128], sizes = [8, 32], strides = [1, 1]} : vector<64x224xf32> to vector<8x32xf32>
    %192 = arith.addf %190, %191 : vector<8x32xf32>
    %193 = vector.extract_strided_slice %2 {offsets = [56, 192], sizes = [8, 32], strides = [1, 1]} : vector<64x224xf32> to vector<8x32xf32>
    %194 = arith.addf %192, %193 : vector<8x32xf32>
    %cst_36 = arith.constant 0.000000e+00 : f32
    %195 = vector.broadcast %cst_36 : f32 to vector<8x32xf32>
    %196 = arith.maximumf %194, %195 : vector<8x32xf32>
    %197 = arith.maximumf %169, %196 : vector<8x32xf32>
    %198 = vector.extract_strided_slice %2 {offsets = [56, 0], sizes = [8, 128], strides = [1, 1]} : vector<64x224xf32> to vector<8x128xf32>
    %199 = vector.broadcast %4 : vector<1x128xf32> to vector<8x128xf32>
    %200 = arith.addf %198, %199 : vector<8x128xf32>
    %cst_37 = arith.constant dense<0.000000e+00> : vector<8x128xf32>
    %201 = tpu.matmul %188, %3, %cst_37 {dimension_numbers = #tpu.dot_dimension_numbers<[1], [0], [0], [1], [0, 0, 1, 1], [], []>} : vector<8x32xf32>, vector<32x128xf32>, vector<8x128xf32> -> vector<8x128xf32>
    %202 = arith.addf %200, %201 : vector<8x128xf32>
    %203 = math.tanh %202 : vector<8x128xf32>
    %cst_38 = arith.constant 5.000000e-01 : f32
    %204 = vector.broadcast %cst_38 : f32 to vector<8x128xf32>
    %205 = arith.mulf %204, %203 : vector<8x128xf32>
    %cst_39 = arith.constant 5.000000e-01 : f32
    %206 = vector.broadcast %cst_39 : f32 to vector<8x128xf32>
    %207 = arith.addf %205, %206 : vector<8x128xf32>
    %208 = vector.extract_strided_slice %207 {offsets = [0, 0], sizes = [8, 32], strides = [1, 1]} : vector<8x128xf32> to vector<8x32xf32>
    %209 = vector.extract_strided_slice %207 {offsets = [0, 32], sizes = [8, 32], strides = [1, 1]} : vector<8x128xf32> to vector<8x32xf32>
    %210 = vector.extract_strided_slice %203 {offsets = [0, 64], sizes = [8, 32], strides = [1, 1]} : vector<8x128xf32> to vector<8x32xf32>
    %211 = vector.extract_strided_slice %207 {offsets = [0, 96], sizes = [8, 32], strides = [1, 1]} : vector<8x128xf32> to vector<8x32xf32>
    %212 = arith.mulf %209, %186 : vector<8x32xf32>
    %213 = arith.mulf %208, %210 : vector<8x32xf32>
    %214 = arith.addf %212, %213 : vector<8x32xf32>
    %215 = math.tanh %214 : vector<8x32xf32>
    %216 = arith.mulf %211, %215 : vector<8x32xf32>
    %217 = vector.extract_strided_slice %2 {offsets = [56, 160], sizes = [8, 32], strides = [1, 1]} : vector<64x224xf32> to vector<8x32xf32>
    %218 = arith.addf %7, %217 : vector<8x32xf32>
    %219 = vector.extract_strided_slice %2 {offsets = [48, 128], sizes = [8, 32], strides = [1, 1]} : vector<64x224xf32> to vector<8x32xf32>
    %220 = arith.addf %218, %219 : vector<8x32xf32>
    %cst_40 = arith.constant 0.000000e+00 : f32
    %221 = vector.broadcast %cst_40 : f32 to vector<8x32xf32>
    %222 = arith.maximumf %220, %221 : vector<8x32xf32>
    %223 = arith.maximumf %197, %222 : vector<8x32xf32>
    %c0_41 = arith.constant 0 : index
    %c0_42 = arith.constant 0 : index
    %224 = vector.load %arg5[%c0_41, %c0_42] : memref<32x32xf32, #tpu.memory_space<vmem>>, vector<32x32xf32>
    %cst_43 = arith.constant dense<0.000000e+00> : vector<8x32xf32>
    %225 = tpu.matmul %216, %224, %cst_43 {dimension_numbers = #tpu.dot_dimension_numbers<[1], [0], [0], [1], [0, 0, 1, 1], [], []>} : vector<8x32xf32>, vector<32x32xf32>, vector<8x32xf32> -> vector<8x32xf32>
    %c0_44 = arith.constant 0 : index
    %c0_45 = arith.constant 0 : index
    %226 = vector.load %arg6[%c0_44, %c0_45] : memref<32x32xf32, #tpu.memory_space<vmem>>, vector<32x32xf32>
    %cst_46 = arith.constant dense<0.000000e+00> : vector<8x32xf32>
    %227 = tpu.matmul %223, %226, %cst_46 {dimension_numbers = #tpu.dot_dimension_numbers<[1], [0], [0], [1], [0, 0, 1, 1], [], []>} : vector<8x32xf32>, vector<32x32xf32>, vector<8x32xf32> -> vector<8x32xf32>
    %228 = arith.addf %225, %227 : vector<8x32xf32>
    %c0_47 = arith.constant 0 : index
    %c0_48 = arith.constant 0 : index
    %229 = vector.load %arg7[%c0_47, %c0_48] : memref<1x32xf32, #tpu.memory_space<vmem>>, vector<1x32xf32>
    %230 = vector.broadcast %229 : vector<1x32xf32> to vector<8x32xf32>
    %231 = arith.addf %228, %230 : vector<8x32xf32>
    %232 = math.tanh %231 : vector<8x32xf32>
    %c0_49 = arith.constant 0 : index
    %c0_50 = arith.constant 0 : index
    %c0_51 = arith.constant 0 : index
    %233 = vector.load %arg8[%c0_49, %c0_50, %c0_51] : memref<10x32x32xf32, #tpu.memory_space<vmem>>, vector<1x32x32xf32>
    %234 = vector.shape_cast %233 : vector<1x32x32xf32> to vector<32x32xf32>
    %cst_52 = arith.constant dense<0.000000e+00> : vector<8x32xf32>
    %235 = tpu.matmul %232, %234, %cst_52 {dimension_numbers = #tpu.dot_dimension_numbers<[1], [0], [0], [1], [0, 0, 1, 1], [], []>} : vector<8x32xf32>, vector<32x32xf32>, vector<8x32xf32> -> vector<8x32xf32>
    %c0_53 = arith.constant 0 : index
    %c0_54 = arith.constant 0 : index
    %c0_55 = arith.constant 0 : index
    %236 = vector.load %arg9[%c0_53, %c0_54, %c0_55] : memref<10x1x32xf32, #tpu.memory_space<vmem>>, vector<1x1x32xf32>
    %237 = vector.shape_cast %236 : vector<1x1x32xf32> to vector<1x32xf32>
    %238 = vector.broadcast %237 : vector<1x32xf32> to vector<8x32xf32>
    %239 = arith.addf %235, %238 : vector<8x32xf32>
    %240 = math.tanh %239 : vector<8x32xf32>
    %c1 = arith.constant 1 : index
    %c0_56 = arith.constant 0 : index
    %c0_57 = arith.constant 0 : index
    %241 = vector.load %arg8[%c1, %c0_56, %c0_57] : memref<10x32x32xf32, #tpu.memory_space<vmem>>, vector<1x32x32xf32>
    %242 = vector.shape_cast %241 : vector<1x32x32xf32> to vector<32x32xf32>
    %cst_58 = arith.constant dense<0.000000e+00> : vector<8x32xf32>
    %243 = tpu.matmul %240, %242, %cst_58 {dimension_numbers = #tpu.dot_dimension_numbers<[1], [0], [0], [1], [0, 0, 1, 1], [], []>} : vector<8x32xf32>, vector<32x32xf32>, vector<8x32xf32> -> vector<8x32xf32>
    %c1_59 = arith.constant 1 : index
    %c0_60 = arith.constant 0 : index
    %c0_61 = arith.constant 0 : index
    %244 = vector.load %arg9[%c1_59, %c0_60, %c0_61] : memref<10x1x32xf32, #tpu.memory_space<vmem>>, vector<1x1x32xf32>
    %245 = vector.shape_cast %244 : vector<1x1x32xf32> to vector<1x32xf32>
    %246 = vector.broadcast %245 : vector<1x32xf32> to vector<8x32xf32>
    %247 = arith.addf %243, %246 : vector<8x32xf32>
    %248 = math.tanh %247 : vector<8x32xf32>
    %c2 = arith.constant 2 : index
    %c0_62 = arith.constant 0 : index
    %c0_63 = arith.constant 0 : index
    %249 = vector.load %arg8[%c2, %c0_62, %c0_63] : memref<10x32x32xf32, #tpu.memory_space<vmem>>, vector<1x32x32xf32>
    %250 = vector.shape_cast %249 : vector<1x32x32xf32> to vector<32x32xf32>
    %cst_64 = arith.constant dense<0.000000e+00> : vector<8x32xf32>
    %251 = tpu.matmul %248, %250, %cst_64 {dimension_numbers = #tpu.dot_dimension_numbers<[1], [0], [0], [1], [0, 0, 1, 1], [], []>} : vector<8x32xf32>, vector<32x32xf32>, vector<8x32xf32> -> vector<8x32xf32>
    %c2_65 = arith.constant 2 : index
    %c0_66 = arith.constant 0 : index
    %c0_67 = arith.constant 0 : index
    %252 = vector.load %arg9[%c2_65, %c0_66, %c0_67] : memref<10x1x32xf32, #tpu.memory_space<vmem>>, vector<1x1x32xf32>
    %253 = vector.shape_cast %252 : vector<1x1x32xf32> to vector<1x32xf32>
    %254 = vector.broadcast %253 : vector<1x32xf32> to vector<8x32xf32>
    %255 = arith.addf %251, %254 : vector<8x32xf32>
    %256 = math.tanh %255 : vector<8x32xf32>
    %c3 = arith.constant 3 : index
    %c0_68 = arith.constant 0 : index
    %c0_69 = arith.constant 0 : index
    %257 = vector.load %arg8[%c3, %c0_68, %c0_69] : memref<10x32x32xf32, #tpu.memory_space<vmem>>, vector<1x32x32xf32>
    %258 = vector.shape_cast %257 : vector<1x32x32xf32> to vector<32x32xf32>
    %cst_70 = arith.constant dense<0.000000e+00> : vector<8x32xf32>
    %259 = tpu.matmul %256, %258, %cst_70 {dimension_numbers = #tpu.dot_dimension_numbers<[1], [0], [0], [1], [0, 0, 1, 1], [], []>} : vector<8x32xf32>, vector<32x32xf32>, vector<8x32xf32> -> vector<8x32xf32>
    %c3_71 = arith.constant 3 : index
    %c0_72 = arith.constant 0 : index
    %c0_73 = arith.constant 0 : index
    %260 = vector.load %arg9[%c3_71, %c0_72, %c0_73] : memref<10x1x32xf32, #tpu.memory_space<vmem>>, vector<1x1x32xf32>
    %261 = vector.shape_cast %260 : vector<1x1x32xf32> to vector<1x32xf32>
    %262 = vector.broadcast %261 : vector<1x32xf32> to vector<8x32xf32>
    %263 = arith.addf %259, %262 : vector<8x32xf32>
    %264 = math.tanh %263 : vector<8x32xf32>
    %c4 = arith.constant 4 : index
    %c0_74 = arith.constant 0 : index
    %c0_75 = arith.constant 0 : index
    %265 = vector.load %arg8[%c4, %c0_74, %c0_75] : memref<10x32x32xf32, #tpu.memory_space<vmem>>, vector<1x32x32xf32>
    %266 = vector.shape_cast %265 : vector<1x32x32xf32> to vector<32x32xf32>
    %cst_76 = arith.constant dense<0.000000e+00> : vector<8x32xf32>
    %267 = tpu.matmul %264, %266, %cst_76 {dimension_numbers = #tpu.dot_dimension_numbers<[1], [0], [0], [1], [0, 0, 1, 1], [], []>} : vector<8x32xf32>, vector<32x32xf32>, vector<8x32xf32> -> vector<8x32xf32>
    %c4_77 = arith.constant 4 : index
    %c0_78 = arith.constant 0 : index
    %c0_79 = arith.constant 0 : index
    %268 = vector.load %arg9[%c4_77, %c0_78, %c0_79] : memref<10x1x32xf32, #tpu.memory_space<vmem>>, vector<1x1x32xf32>
    %269 = vector.shape_cast %268 : vector<1x1x32xf32> to vector<1x32xf32>
    %270 = vector.broadcast %269 : vector<1x32xf32> to vector<8x32xf32>
    %271 = arith.addf %267, %270 : vector<8x32xf32>
    %272 = math.tanh %271 : vector<8x32xf32>
    %c5 = arith.constant 5 : index
    %c0_80 = arith.constant 0 : index
    %c0_81 = arith.constant 0 : index
    %273 = vector.load %arg8[%c5, %c0_80, %c0_81] : memref<10x32x32xf32, #tpu.memory_space<vmem>>, vector<1x32x32xf32>
    %274 = vector.shape_cast %273 : vector<1x32x32xf32> to vector<32x32xf32>
    %cst_82 = arith.constant dense<0.000000e+00> : vector<8x32xf32>
    %275 = tpu.matmul %272, %274, %cst_82 {dimension_numbers = #tpu.dot_dimension_numbers<[1], [0], [0], [1], [0, 0, 1, 1], [], []>} : vector<8x32xf32>, vector<32x32xf32>, vector<8x32xf32> -> vector<8x32xf32>
    %c5_83 = arith.constant 5 : index
    %c0_84 = arith.constant 0 : index
    %c0_85 = arith.constant 0 : index
    %276 = vector.load %arg9[%c5_83, %c0_84, %c0_85] : memref<10x1x32xf32, #tpu.memory_space<vmem>>, vector<1x1x32xf32>
    %277 = vector.shape_cast %276 : vector<1x1x32xf32> to vector<1x32xf32>
    %278 = vector.broadcast %277 : vector<1x32xf32> to vector<8x32xf32>
    %279 = arith.addf %275, %278 : vector<8x32xf32>
    %280 = math.tanh %279 : vector<8x32xf32>
    %c6 = arith.constant 6 : index
    %c0_86 = arith.constant 0 : index
    %c0_87 = arith.constant 0 : index
    %281 = vector.load %arg8[%c6, %c0_86, %c0_87] : memref<10x32x32xf32, #tpu.memory_space<vmem>>, vector<1x32x32xf32>
    %282 = vector.shape_cast %281 : vector<1x32x32xf32> to vector<32x32xf32>
    %cst_88 = arith.constant dense<0.000000e+00> : vector<8x32xf32>
    %283 = tpu.matmul %280, %282, %cst_88 {dimension_numbers = #tpu.dot_dimension_numbers<[1], [0], [0], [1], [0, 0, 1, 1], [], []>} : vector<8x32xf32>, vector<32x32xf32>, vector<8x32xf32> -> vector<8x32xf32>
    %c6_89 = arith.constant 6 : index
    %c0_90 = arith.constant 0 : index
    %c0_91 = arith.constant 0 : index
    %284 = vector.load %arg9[%c6_89, %c0_90, %c0_91] : memref<10x1x32xf32, #tpu.memory_space<vmem>>, vector<1x1x32xf32>
    %285 = vector.shape_cast %284 : vector<1x1x32xf32> to vector<1x32xf32>
    %286 = vector.broadcast %285 : vector<1x32xf32> to vector<8x32xf32>
    %287 = arith.addf %283, %286 : vector<8x32xf32>
    %288 = math.tanh %287 : vector<8x32xf32>
    %c7 = arith.constant 7 : index
    %c0_92 = arith.constant 0 : index
    %c0_93 = arith.constant 0 : index
    %289 = vector.load %arg8[%c7, %c0_92, %c0_93] : memref<10x32x32xf32, #tpu.memory_space<vmem>>, vector<1x32x32xf32>
    %290 = vector.shape_cast %289 : vector<1x32x32xf32> to vector<32x32xf32>
    %cst_94 = arith.constant dense<0.000000e+00> : vector<8x32xf32>
    %291 = tpu.matmul %288, %290, %cst_94 {dimension_numbers = #tpu.dot_dimension_numbers<[1], [0], [0], [1], [0, 0, 1, 1], [], []>} : vector<8x32xf32>, vector<32x32xf32>, vector<8x32xf32> -> vector<8x32xf32>
    %c7_95 = arith.constant 7 : index
    %c0_96 = arith.constant 0 : index
    %c0_97 = arith.constant 0 : index
    %292 = vector.load %arg9[%c7_95, %c0_96, %c0_97] : memref<10x1x32xf32, #tpu.memory_space<vmem>>, vector<1x1x32xf32>
    %293 = vector.shape_cast %292 : vector<1x1x32xf32> to vector<1x32xf32>
    %294 = vector.broadcast %293 : vector<1x32xf32> to vector<8x32xf32>
    %295 = arith.addf %291, %294 : vector<8x32xf32>
    %296 = math.tanh %295 : vector<8x32xf32>
    %c8 = arith.constant 8 : index
    %c0_98 = arith.constant 0 : index
    %c0_99 = arith.constant 0 : index
    %297 = vector.load %arg8[%c8, %c0_98, %c0_99] : memref<10x32x32xf32, #tpu.memory_space<vmem>>, vector<1x32x32xf32>
    %298 = vector.shape_cast %297 : vector<1x32x32xf32> to vector<32x32xf32>
    %cst_100 = arith.constant dense<0.000000e+00> : vector<8x32xf32>
    %299 = tpu.matmul %296, %298, %cst_100 {dimension_numbers = #tpu.dot_dimension_numbers<[1], [0], [0], [1], [0, 0, 1, 1], [], []>} : vector<8x32xf32>, vector<32x32xf32>, vector<8x32xf32> -> vector<8x32xf32>
    %c8_101 = arith.constant 8 : index
    %c0_102 = arith.constant 0 : index
    %c0_103 = arith.constant 0 : index
    %300 = vector.load %arg9[%c8_101, %c0_102, %c0_103] : memref<10x1x32xf32, #tpu.memory_space<vmem>>, vector<1x1x32xf32>
    %301 = vector.shape_cast %300 : vector<1x1x32xf32> to vector<1x32xf32>
    %302 = vector.broadcast %301 : vector<1x32xf32> to vector<8x32xf32>
    %303 = arith.addf %299, %302 : vector<8x32xf32>
    %304 = math.tanh %303 : vector<8x32xf32>
    %c9 = arith.constant 9 : index
    %c0_104 = arith.constant 0 : index
    %c0_105 = arith.constant 0 : index
    %305 = vector.load %arg8[%c9, %c0_104, %c0_105] : memref<10x32x32xf32, #tpu.memory_space<vmem>>, vector<1x32x32xf32>
    %306 = vector.shape_cast %305 : vector<1x32x32xf32> to vector<32x32xf32>
    %cst_106 = arith.constant dense<0.000000e+00> : vector<8x32xf32>
    %307 = tpu.matmul %304, %306, %cst_106 {dimension_numbers = #tpu.dot_dimension_numbers<[1], [0], [0], [1], [0, 0, 1, 1], [], []>} : vector<8x32xf32>, vector<32x32xf32>, vector<8x32xf32> -> vector<8x32xf32>
    %c9_107 = arith.constant 9 : index
    %c0_108 = arith.constant 0 : index
    %c0_109 = arith.constant 0 : index
    %308 = vector.load %arg9[%c9_107, %c0_108, %c0_109] : memref<10x1x32xf32, #tpu.memory_space<vmem>>, vector<1x1x32xf32>
    %309 = vector.shape_cast %308 : vector<1x1x32xf32> to vector<1x32xf32>
    %310 = vector.broadcast %309 : vector<1x32xf32> to vector<8x32xf32>
    %311 = arith.addf %307, %310 : vector<8x32xf32>
    %312 = math.tanh %311 : vector<8x32xf32>
    %c0_110 = arith.constant 0 : index
    %c0_111 = arith.constant 0 : index
    %313 = vector.load %arg10[%c0_110, %c0_111] : memref<32x1xf32, #tpu.memory_space<vmem>>, vector<32x1xf32>
    %cst_112 = arith.constant dense<0.000000e+00> : vector<8x1xf32>
    %314 = tpu.matmul %312, %313, %cst_112 {dimension_numbers = #tpu.dot_dimension_numbers<[1], [0], [0], [1], [0, 0, 1, 1], [], []>} : vector<8x32xf32>, vector<32x1xf32>, vector<8x1xf32> -> vector<8x1xf32>
    %c0_113 = arith.constant 0 : index
    %c0_114 = arith.constant 0 : index
    %315 = vector.load %arg11[%c0_113, %c0_114] : memref<1x1xf32, #tpu.memory_space<vmem>>, vector<1x1xf32>
    %316 = vector.broadcast %315 : vector<1x1xf32> to vector<8x1xf32>
    %317 = arith.addf %314, %316 : vector<8x1xf32>
    %318 = arith.negf %317 : vector<8x1xf32>
    %319 = math.exp %318 : vector<8x1xf32>
    %cst_115 = arith.constant 1.000000e+00 : f32
    %320 = vector.broadcast %cst_115 : f32 to vector<8x1xf32>
    %321 = arith.addf %320, %319 : vector<8x1xf32>
    %322 = arith.divf %320, %321 : vector<8x1xf32>
    %c0_116 = arith.constant 0 : index
    %c0_117 = arith.constant 0 : index
    %323 = vector.load %arg12[%c0_116, %c0_117] : memref<8x1xf32, #tpu.memory_space<vmem>>, vector<8x1xf32>
    tpu.vector_store %arg12[%c0_116, %c0_117], %322 {strides = array<i32>} : memref<8x1xf32, #tpu.memory_space<vmem>>, vector<8x1xf32>,
    return
  }
}

</mosaic_0001>

<bundles_post_ra>
// kernel: tpu_custom_call.1
= control target key start
LH: loop header
LB: loop body
LE: loop exit
PB: predicated region body
PF: predicated region fallthrough
CT: control target
= control target key end

     0   :  { %s3197_s0 = inlined_call_operand.vmem [shape: f32[64,16], index: 0, kind: input, shape index: {}]   ;;  %s3198_s1 = inlined_call_operand.vmem [shape: f32[16,224], index: 1, kind: input, shape index: {}]   ;;  %s3199_s2 = inlined_call_operand.hbm [shape: f32[1,128], index: 2, kind: input, shape index: {}]   ;;  %s3200_s3 = inlined_call_operand.vmem [shape: f32[32,128], index: 3, kind: input, shape index: {}]   ;;  %s3201_s4 = inlined_call_operand.hbm [shape: f32[1,32], index: 4, kind: input, shape index: {}]   ;;  %s3202_s5 = inlined_call_operand.vmem [shape: f32[32,32], index: 5, kind: input, shape index: {}]   ;;  %s3203_s6 = inlined_call_operand.hbm [shape: f32[32,32], index: 6, kind: input, shape index: {}]   ;;  %s3204_s7 = inlined_call_operand.vmem [shape: f32[1,32], index: 7, kind: input, shape index: {}]   ;;  %s3205_s8 = inlined_call_operand.hbm [shape: f32[10,32,32], index: 8, kind: input, shape index: {}]   ;;  %s3206_s9 = inlined_call_operand.vmem [shape: f32[10,1,32], index: 9, kind: input, shape index: {}]   ;;  %s3207_s10 = inlined_call_operand.vmem [shape: f32[32,1], index: 10, kind: input, shape index: {}]   ;;  %s3208_s11 = inlined_call_operand.<no memory space> [shape: f32[1,1], index: 11, kind: input, shape index: {}]   ;;  %s3209_s12 = inlined_call_operand.vmem [shape: f32[8,1], index: 12, kind: output, shape index: {}]  }
   0x1   :  { %v17_v0 = vstv %s3208_s11 }
   0x2   :  { %18 = vst [vmem:[#allocation2] sm:$0x1] %v17_v0 }
   0x3   :  { %19 = vsyncpa [#allocation4], 0 }
   0x4   :  { %20 = vsyncpa [#allocation6], 0 }
   0x5   :  { %21 = vsyncpa [#allocation9], 0  ;;  %s2711_s23 = smov [#allocation5]   ;;  %s2712_s25 = smov [#allocation3]  }
   0x6   :  { %s44_s24 = sshll.u32 %s2711_s23, 4  ;;  %s32_s26 = sshll.u32 %s2712_s25, 4  ;;  %s45_s24 = int_to_ptr.vmem [resolvable:$true] %s44_s24  ;;  %s33_s26 = int_to_ptr.vmem [resolvable:$true] %s32_s26 }
   0x7   :  { %s2633_s27 = scalar_lea.vmem %s45_s24, 16  ;;  %s2637_s28 = scalar_lea.vmem %s45_s24, 32 }
   0x8   :  { %p2634_p0 = scmp.ne.s32.totalorder %s45_s24, %s2633_s27  ;;  %p2638_p1 = scmp.lt.s32.totalorder %s45_s24, %s45_s24 }
   0x9   :  { %p2639_p2 = scmp.lt.s32.totalorder %s2637_s28, %s2633_s27 }
   0xb   :  { %p2640_p3 = por %p2639_p2, %p2638_p1 }
   0xd   :  { %p2641_p4 = pnand %p2640_p3, %p2634_p0 }
   0xf   :  { %2644 = shalt.err (!%p2641_p4)
}
  0x10   :  { %47 = dma.hbm_to_vmem [thread:$0]  %s3201_s4, 16, %s45_s24, [#allocation6]  }
  0x11   :  { %s2653_s30 = scalar_lea.vmem %s33_s26, 16  ;;  %s2657_s13 = scalar_lea.vmem %s33_s26, 32 }
  0x12   :  { %p2654_p5 = scmp.ne.s32.totalorder %s33_s26, %s2653_s30  ;;  %p2658_p6 = scmp.lt.s32.totalorder %s33_s26, %s33_s26 }
  0x13   :  { %p2659_p7 = scmp.lt.s32.totalorder %s2657_s13, %s2653_s30 }
  0x15   :  { %p2660_p8 = por %p2659_p7, %p2658_p6 }
  0x17   :  { %p2661_p9 = pnand %p2660_p8, %p2654_p5 }
  0x19   :  { %2664 = shalt.err (!%p2661_p9)
}
  0x1a   :  { %35 = dma.hbm_to_vmem [thread:$0]  %s3199_s2, 16, %s33_s26, [#allocation4]  }
  0x1b   :  { %s2713_s16 = smov [#allocation7]  }
  0x1c   :  { %s55_s17 = sshll.u32 %s2713_s16, 4  ;;  %s56_s17 = int_to_ptr.vmem [resolvable:$true] %s55_s17 }
  0x1d   :  { %s2673_s18 = scalar_lea.vmem %s56_s17, 512  ;;  %p2678_p11 = scmp.lt.s32.totalorder %s56_s17, %s56_s17 }
  0x1e   :  { %p2674_p10 = scmp.ne.s32.totalorder %s56_s17, %s2673_s18  ;;  %p2679_p12 = scmp.lt.s32.totalorder %s2673_s18, %s2673_s18 }
  0x20   :  { %p2680_p13 = por %p2679_p12, %p2678_p11 }
  0x22   :  { %p2681_p0 = pnand %p2680_p13, %p2674_p10 }
  0x24   :  { %2684 = shalt.err (!%p2681_p0)
}
  0x25   :  { %s2714_s4 = smov 128   ;;  %s2715_s19 = smov 8  }
  0x26   :  { %61 = dma.hbm_to_vmem [thread:$0]  %s3203_s6, 512, %s56_s17, [#allocation6], %s2714_s4, %s2714_s4, %s2715_s19  }
  0x27   :  { %s2716_s22 = smov [#allocation8]  }
  0x28   :  { %s69_s23 = sshll.u32 %s2716_s22, 4  ;;  %s70_s23 = int_to_ptr.vmem [resolvable:$true] %s69_s23 }
  0x29   :  { %s2693_s2 = scalar_lea.vmem %s70_s23, 5120  ;;  %p2698_p2 = scmp.lt.s32.totalorder %s70_s23, %s70_s23 }
  0x2a   :  { %p2694_p1 = scmp.ne.s32.totalorder %s70_s23, %s2693_s2  ;;  %p2699_p3 = scmp.lt.s32.totalorder %s2693_s2, %s2693_s2 }
  0x2c   :  { %p2700_p4 = por %p2699_p3, %p2698_p2 }
  0x2e   :  { %p2701_p5 = pnand %p2700_p4, %p2694_p1 }
  0x30   :  { %2704 = shalt.err (!%p2701_p5)
}
  0x31   :  { %75 = dma.hbm_to_vmem [thread:$0]  %s3205_s8, 5120, %s70_s23, [#allocation9], %s2714_s4, %s2714_s4, %s2715_s19  }
  0x32   :  { %2705 = dma.done.wait [#allocation4], 16  }
  0x33   :  { %2706 = vsyncadd [#allocation4], 4294967280 }
  0x34   :  { %2707 = dma.done.wait [#allocation6], 528  }
  0x35   :  { %2708 = vsyncadd [#allocation6], 4294966768 }
  0x36   :  { %2709 = dma.done.wait [#allocation9], 5120  }
  0x37   :  { %2710 = vsyncadd [#allocation9], 4294962176  ;;  %v2717_v1 = vmov 0.0   ;;  %v105_v2 = vld [vmem:[%s3198_s1 + $0x18] sm:$0xff]  ;;  %v104_v3 = vld [vmem:[%s3198_s1 + $0x10] sm:$0xff]  ;;  %vm106_vm0 = vcmask 130048  }
  0x38   :  { %195 = vmatprep.mubr.f32.mxu0 %v2717_v1  ;;  %2336 = vmatprep.subr.mxu1 %v2717_v1  ;;  %v103_v4 = vld [vmem:[%s3198_s1 + $0x8] sm:$0xff]  ;;  %v102_v5 = vld [vmem:[%s3198_s1] sm:$0xff]  ;;  %s2718_s1 = smov 64   ;;  %v2829_v15 = vld [vmem:[%s3200_s3 + $0x18] sm:$0xff]  ;;  %vm2719_vm1 = vmmov 0   ;;  %s2721_s2 = smov 32  }
  0x39   :  { %159 = vmatprep.subr.mxu0 %v105_v2  ;;  %v94_v6 = vld [vmem:[%s3197_s0] sm:$0xff]  ;;  %v2834_v16 = vld [vmem:[%s3200_s3 + $0x10] sm:$0xff]  ;;  %v95_v17 = vld [vmem:[%s3197_s0 + $0x8] sm:$0xff]  ;;  %2337 = vmatpush3.msra.mxu1 %v2829_v15  ;;  %vm293_vm2 = vcmask 261120   ;;  %vm2175_vm3 = vcmask 7168  }
  0x3a   :  { %160 = vmatpush1.msra.mxu0 %v104_v3  ;;  %v2822_v7 = vld [vmem:[#allocation3] ss:$0 sm:$0xff]  ;;  %2338 = vmatprep.subr.mxu1 %v2717_v1  ;;  %v2845_v18 = vld [vmem:[%s3200_s3 + $0x8] sm:$0xff]  ;;  %v96_v39 = vld [vmem:[%s3197_s0 + $0x10] sm:$0xff] }
  0x3b   :  { %161 = vmatprep.subr.mxu0 %v103_v4  ;;  %2344 = vmatprep.mubr.msk.f32.mxu1 %vm2719_vm1, %v2717_v1  ;;  %v2855_v19 = vld [vmem:[%s3200_s3] sm:$0xff]  ;;  %s2720_s3 = smov 96   ;;  %v97_v58 = vld [vmem:[%s3197_s0 + $0x18] sm:$0xff] }
  0x3c   :  { %162 = vmatpush1.msra.mxu0 %v102_v5  ;;  %2339 = vmatpush3.msra.mxu1 %v2834_v16 }
  0x3d   :  { %2184 = vmatmul.mubr.msk.f32.vlgmr.msra.gmra.mxu0 %vm106_vm0, %v94_v6  ;;  %2380 = vmatprep.subr.mxu0 %v2717_v1 }
  0x3e   :  { %201 = vmatprep.mubr.f32.mxu0 %v2717_v1  ;;  %2340 = vmatprep.subr.mxu1 %v2717_v1 }
  0x3f   :  { %2381 = vmatpush3.msra.mxu0 %v2829_v15  ;;  %2341 = vmatpush3.msra.mxu1 %v2845_v18 }
  0x40   :  { %2382 = vmatprep.subr.mxu0 %v2717_v1  ;;  %2342 = vmatprep.subr.mxu1 %v2717_v1 }
  0x41   :  { %2185 = vmatmul.mubr.msk.f32.gmra.mxu0 %vm106_vm0, %v95_v17  ;;  %2343 = vmatpush3.msra.mxu1 %v2855_v19  ;;  %v98_v17 = vld [vmem:[%s3197_s0 + $0x20] sm:$0xff] }
  0x42   :  { %207 = vmatprep.mubr.f32.mxu0 %v2717_v1  ;;  %2383 = vmatpush3.msra.mxu0 %v2834_v16 }
  0x43   :  { %2384 = vmatprep.subr.mxu0 %v2717_v1  ;;  %2347 = vmatprep.subr.mxu1 %v2717_v1 }
  0x44   :  { %2385 = vmatpush3.msra.mxu0 %v2845_v18 }
  0x45   :  { %2386 = vmatprep.subr.mxu0 %v2717_v1  ;;  %2186 = vmatmul.mubr.msk.f32.gmra.mxu0 %vm106_vm0, %v96_v39  ;;  %v99_v39 = vld [vmem:[%s3197_s0 + $0x28] sm:$0xff] }
  0x46   :  { %2387 = vmatpush3.msra.mxu0 %v2855_v19  ;;  %213 = vmatprep.mubr.f32.mxu0 %v2717_v1 }
  0x47   :  { %2402 = vmatprep.subr.mxu0 %v2717_v1 }
  0x49   :  { %2187 = vmatmul.mubr.msk.f32.gmra.mxu0 %vm106_vm0, %v97_v58 }
  0x4a   :  { %219 = vmatprep.mubr.f32.mxu0 %v2717_v1 }
  0x4d   :  { %2188 = vmatmul.mubr.msk.f32.gmra.mxu0 %vm106_vm0, %v98_v17 }
  0x4e   :  { %225 = vmatprep.mubr.f32.mxu0 %v2717_v1 }
  0x51   :  { %2189 = vmatmul.mubr.msk.f32.gmra.mxu0 %vm106_vm0, %v99_v39  ;;  %v1059_v39 = vld [vmem:[#allocation7 + $0x18] sm:$0xff] }
  0x52   :  { %231 = vmatprep.mubr.f32.mxu0 %v2717_v1 }
  0xfd   :  { %v197_v8 = vpop.f32.mrf.mxu0 }
  0xfe   :  { %v262_v9 = vadd.f32 %v2822_v7, %v197_v8 }
  0xff   :  { %v2883_v24 = vpop.f32.mrf.mxu0 }
 0x100   :  { %2567 = vtanh.f32 %v262_v9 }
 0x101   :  { %v203_v25 = vpop.f32.mrf.mxu0 }
 0x102   :  { %v289_v26 = vadd.f32 %v2822_v7, %v203_v25 }
 0x103   :  { %v2906_v44 = vpop.f32.mrf.mxu0 }
 0x105   :  { %v209_v45 = vpop.f32.mrf.mxu0 }
 0x106   :  { %v403_v46 = vadd.f32 %v2822_v7, %v209_v45 }
 0x107   :  { %v2929_v63 = vpop.f32.mrf.mxu0 }
 0x109   :  { %v215_v0 = vpop.f32.mrf.mxu0 }
 0x10a   :  { %v512_v2 = vadd.f32 %v2822_v7, %v215_v0 }
 0x10b   :  { %v2952_v25 = vpop.f32.mrf.mxu0 }
 0x10d   :  { %v2568_v10 = vpop.eup %2567 }
 0x10e   :  { %267 = vrot.lane.b32.xlu0 %v2568_v10, %s2718_s1  ;;  %v264_v11 = vmul.f32 0.5, %v2568_v10 }
 0x110   :  { %v265_v12 = vadd.f32 0.5, %v264_v11 }
 0x180   :  { %v268_v13 = vpop.permute.xlu0 %267 }
 0x181   :  { %v270_v14 = vmul.f32 %v268_v13, %v265_v12 }
 0x183   :  { %2569 = vtanh.f32 %v270_v14 }
 0x190   :  { %v2570_v20 = vpop.eup %2569 }
 0x191   :  { %273 = vrot.lane.b32.xlu0 %v2570_v20, %s2720_s3 }
 0x195   :  { %371 = vrot.lane.b32.xlu0 %v270_v14, %s2721_s2 }
 0x203   :  { %v274_v21 = vpop.permute.xlu0 %273 }
 0x204   :  { %v276_v22 = vmul.f32 %v274_v21, %v265_v12 }
 0x206   :  { %291 = vrot.lane.b32.xlu1 %v276_v22, %s2721_s2 }
 0x207   :  { %v372_v35 = vpop.permute.xlu0 %371 }
 0x278   :  { %v292_v23 = vpop.permute.xlu1 %291 }
 0x279   :  { %2345 = vmatmul.mubr.msk.f32.vlgmr.msra.gmra.mxu1 %vm293_vm2, %v292_v23 }
 0x27a   :  { %2348 = vmatpush3.msra.mxu1 %v2829_v15  ;;  %2355 = vmatprep.mubr.msk.f32.mxu1 %vm2719_vm1, %v2717_v1 }
 0x27b   :  { %2349 = vmatprep.subr.mxu1 %v2717_v1 }
 0x27c   :  { %2350 = vmatpush3.msra.mxu1 %v2834_v16 }
 0x27d   :  { %2351 = vmatprep.subr.mxu1 %v2717_v1 }
 0x27e   :  { %2352 = vmatpush3.msra.mxu1 %v2845_v18 }
 0x27f   :  { %2353 = vmatprep.subr.mxu1 %v2717_v1 }
 0x280   :  { %2354 = vmatpush3.msra.mxu1 %v2855_v19 }
 0x281   :  { %2358 = vmatprep.subr.mxu1 %v2717_v1 }
 0x339   :  { %v362_v27 = vpop.f32.mrf.mxu1 }
 0x33a   :  { %v366_v28 = vadd.f32 %v362_v27, %v289_v26  ;;  %v221_v26 = vpop.f32.mrf.mxu0 }
 0x33b   :  { %v2346_v29 = vpop.f32.mrf.mxu1  ;;  %v621_v27 = vadd.f32 %v2822_v7, %v221_v26 }
 0x33c   :  { %2571 = vtanh.f32 %v366_v28 }
 0x349   :  { %v2572_v30 = vpop.eup %2571 }
 0x34a   :  { %376 = vrot.lane.b32.xlu1 %v2572_v30, %s2718_s1  ;;  %v368_v31 = vmul.f32 0.5, %v2572_v30 }
 0x34c   :  { %v369_v32 = vadd.f32 0.5, %v368_v31 }
 0x34e   :  { %v374_v36 = vmul.f32 %v372_v35, %v369_v32 }
 0x3bc   :  { %v377_v33 = vpop.permute.xlu1 %376 }
 0x3bd   :  { %v379_v34 = vmul.f32 %v377_v33, %v369_v32 }
 0x3bf   :  { %381 = vrot.lane.b32.xlu1 %v379_v34, %s2721_s2 }
 0x431   :  { %v382_v37 = vpop.permute.xlu1 %381 }
 0x432   :  { %v384_v38 = vadd.f32 %v382_v37, %v374_v36 }
 0x434   :  { %2573 = vtanh.f32 %v384_v38 }
 0x441   :  { %v2574_v40 = vpop.eup %2573 }
 0x442   :  { %387 = vrot.lane.b32.xlu0 %v2574_v40, %s2718_s1  ;;  %v100_v40 = vld [vmem:[%s3197_s0 + $0x30] sm:$0xff] }
 0x443   :  { %2190 = vmatmul.mubr.msk.f32.gmra.mxu0 %vm106_vm0, %v100_v40  ;;  %v1058_v40 = vld [vmem:[#allocation7 + $0x10] sm:$0xff] }
 0x444   :  { %237 = vmatprep.mubr.f32.mxu0 %v2717_v1 }
 0x4b4   :  { %v388_v41 = vpop.permute.xlu0 %387 }
 0x4b5   :  { %v390_v42 = vmul.f32 %v388_v41, %v369_v32  ;;  %v101_v41 = vld [vmem:[%s3197_s0 + $0x38] sm:$0xff] }
 0x4b6   :  { %2191 = vmatmul.mubr.msk.f32.gmra.mxu0 %vm106_vm0, %v101_v41  ;;  %v1057_v41 = vld [vmem:[#allocation7 + $0x8] sm:$0xff] }
 0x4b7   :  { %405 = vrot.lane.b32.xlu1 %v390_v42, %s2721_s2  ;;  %2388 = vmatprep.mubr.msk.f32.mxu0 %vm2719_vm1, %v2717_v1 }
 0x529   :  { %v406_v43 = vpop.permute.xlu1 %405 }
 0x52a   :  { %2356 = vmatmul.mubr.msk.f32.vlgmr.msra.gmra.mxu1 %vm293_vm2, %v406_v43 }
 0x52b   :  { %2359 = vmatpush3.msra.mxu1 %v2829_v15  ;;  %2366 = vmatprep.mubr.msk.f32.mxu1 %vm2719_vm1, %v2717_v1 }
 0x52c   :  { %2360 = vmatprep.subr.mxu1 %v2717_v1 }
 0x52d   :  { %2361 = vmatpush3.msra.mxu1 %v2834_v16 }
 0x52e   :  { %2362 = vmatprep.subr.mxu1 %v2717_v1 }
 0x52f   :  { %2363 = vmatpush3.msra.mxu1 %v2845_v18 }
 0x530   :  { %2364 = vmatprep.subr.mxu1 %v2717_v1 }
 0x531   :  { %2365 = vmatpush3.msra.mxu1 %v2855_v19 }
 0x532   :  { %2369 = vmatprep.subr.mxu1 %v2717_v1 }
 0x5ea   :  { %v475_v47 = vpop.f32.mrf.mxu1 }
 0x5eb   :  { %v479_v48 = vadd.f32 %v475_v47, %v403_v46  ;;  %v2986_v47 = vpop.f32.mrf.mxu0 }
 0x5ec   :  { %v2357_v49 = vpop.f32.mrf.mxu1 }
 0x5ed   :  { %2575 = vtanh.f32 %v479_v48 }
 0x5fa   :  { %v2576_v50 = vpop.eup %2575 }
 0x5fb   :  { %485 = vrot.lane.b32.xlu0 %v2576_v50, %s2718_s1  ;;  %v481_v51 = vmul.f32 0.5, %v2576_v50 }
 0x5fd   :  { %v482_v52 = vadd.f32 0.5, %v481_v51 }
 0x5ff   :  { %v483_v55 = vmul.f32 %v482_v52, %v384_v38 }
 0x66d   :  { %v486_v53 = vpop.permute.xlu0 %485 }
 0x66e   :  { %v488_v54 = vmul.f32 %v486_v53, %v482_v52 }
 0x670   :  { %490 = vrot.lane.b32.xlu1 %v488_v54, %s2721_s2 }
 0x6e2   :  { %v491_v56 = vpop.permute.xlu1 %490 }
 0x6e3   :  { %v493_v57 = vadd.f32 %v491_v56, %v483_v55 }
 0x6e5   :  { %2577 = vtanh.f32 %v493_v57 }
 0x6f2   :  { %v2578_v59 = vpop.eup %2577 }
 0x6f3   :  { %496 = vrot.lane.b32.xlu0 %v2578_v59, %s2718_s1 }
 0x765   :  { %v497_v60 = vpop.permute.xlu0 %496 }
 0x766   :  { %v499_v61 = vmul.f32 %v497_v60, %v482_v52 }
 0x768   :  { %514 = vrot.lane.b32.xlu1 %v499_v61, %s2721_s2 }
 0x7da   :  { %v515_v62 = vpop.permute.xlu1 %514 }
 0x7db   :  { %2367 = vmatmul.mubr.msk.f32.vlgmr.msra.gmra.mxu1 %vm293_vm2, %v515_v62 }
 0x7dc   :  { %2370 = vmatpush3.msra.mxu1 %v2829_v15  ;;  %2377 = vmatprep.mubr.msk.f32.mxu1 %vm2719_vm1, %v2717_v1 }
 0x7dd   :  { %2371 = vmatprep.subr.mxu1 %v2717_v1 }
 0x7de   :  { %2372 = vmatpush3.msra.mxu1 %v2834_v16 }
 0x7df   :  { %2373 = vmatprep.subr.mxu1 %v2717_v1 }
 0x7e0   :  { %2374 = vmatpush3.msra.mxu1 %v2845_v18 }
 0x7e1   :  { %2375 = vmatprep.subr.mxu1 %v2717_v1 }
 0x7e2   :  { %2376 = vmatpush3.msra.mxu1 %v2855_v19 }
 0x7e3   :  { %2391 = vmatprep.subr.mxu1 %v2717_v1 }
 0x89b   :  { %v584_v3 = vpop.f32.mrf.mxu1 }
 0x89c   :  { %v588_v4 = vadd.f32 %v584_v3, %v512_v2 }
 0x89d   :  { %v2368_v5 = vpop.f32.mrf.mxu1 }
 0x89e   :  { %2579 = vtanh.f32 %v588_v4 }
 0x8ab   :  { %v2580_v6 = vpop.eup %2579 }
 0x8ac   :  { %594 = vrot.lane.b32.xlu0 %v2580_v6, %s2718_s1  ;;  %v590_v8 = vmul.f32 0.5, %v2580_v6 }
 0x8ae   :  { %v591_v9 = vadd.f32 0.5, %v590_v8 }
 0x8b0   :  { %v592_v12 = vmul.f32 %v591_v9, %v493_v57 }
 0x91e   :  { %v595_v10 = vpop.permute.xlu0 %594 }
 0x91f   :  { %v597_v11 = vmul.f32 %v595_v10, %v591_v9 }
 0x921   :  { %599 = vrot.lane.b32.xlu1 %v597_v11, %s2721_s2 }
 0x993   :  { %v600_v13 = vpop.permute.xlu1 %599 }
 0x994   :  { %v602_v14 = vadd.f32 %v600_v13, %v592_v12 }
 0x996   :  { %2581 = vtanh.f32 %v602_v14 }
 0x9a3   :  { %v2582_v20 = vpop.eup %2581 }
 0x9a4   :  { %605 = vrot.lane.b32.xlu0 %v2582_v20, %s2718_s1 }
 0xa16   :  { %v606_v21 = vpop.permute.xlu0 %605 }
 0xa17   :  { %v608_v22 = vmul.f32 %v606_v21, %v591_v9 }
 0xa19   :  { %623 = vrot.lane.b32.xlu1 %v608_v22, %s2721_s2 }
 0xa8b   :  { %v624_v23 = vpop.permute.xlu1 %623 }
 0xa8c   :  { %2378 = vmatmul.mubr.msk.f32.vlgmr.msra.gmra.mxu1 %vm293_vm2, %v624_v23 }
 0xa8d   :  { %2392 = vmatpush3.msra.mxu1 %v2829_v15  ;;  %2399 = vmatprep.mubr.msk.f32.mxu1 %vm2719_vm1, %v2717_v1 }
 0xa8e   :  { %2393 = vmatprep.subr.mxu1 %v2717_v1 }
 0xa8f   :  { %2394 = vmatpush3.msra.mxu1 %v2834_v16 }
 0xa90   :  { %2395 = vmatprep.subr.mxu1 %v2717_v1 }
 0xa91   :  { %2396 = vmatpush3.msra.mxu1 %v2845_v18 }
 0xa92   :  { %2397 = vmatprep.subr.mxu1 %v2717_v1 }
 0xa93   :  { %2398 = vmatpush3.msra.mxu1 %v2855_v19 }
 0xa94   :  { %2413 = vmatprep.subr.mxu1 %v2717_v1 }
 0xb4c   :  { %v693_v28 = vpop.f32.mrf.mxu1 }
 0xb4d   :  { %v697_v29 = vadd.f32 %v693_v28, %v621_v27 }
 0xb4e   :  { %v2379_v30 = vpop.f32.mrf.mxu1 }
 0xb4f   :  { %2583 = vtanh.f32 %v697_v29 }
 0xb5c   :  { %v2584_v31 = vpop.eup %2583 }
 0xb5d   :  { %703 = vrot.lane.b32.xlu0 %v2584_v31, %s2718_s1  ;;  %v699_v32 = vmul.f32 0.5, %v2584_v31 }
 0xb5f   :  { %v700_v33 = vadd.f32 0.5, %v699_v32 }
 0xb61   :  { %v701_v36 = vmul.f32 %v700_v33, %v602_v14 }
 0xbcf   :  { %v704_v34 = vpop.permute.xlu0 %703 }
 0xbd0   :  { %v706_v35 = vmul.f32 %v704_v34, %v700_v33 }
 0xbd2   :  { %708 = vrot.lane.b32.xlu1 %v706_v35, %s2721_s2 }
 0xc44   :  { %v709_v37 = vpop.permute.xlu1 %708 }
 0xc45   :  { %v711_v38 = vadd.f32 %v709_v37, %v701_v36 }
 0xc47   :  { %2585 = vtanh.f32 %v711_v38 }
 0xc54   :  { %v2586_v42 = vpop.eup %2585 }
 0xc55   :  { %714 = vrot.lane.b32.xlu0 %v2586_v42, %s2718_s1  ;;  %v1056_v42 = vld [vmem:[#allocation7] sm:$0xff] }
 0xcc7   :  { %v715_v43 = vpop.permute.xlu0 %714 }
 0xcc8   :  { %v717_v45 = vmul.f32 %v715_v43, %v700_v33  ;;  %v1055_v43 = vld [vmem:[%s3202_s5 + $0x18] sm:$0xff] }
 0xcca   :  { %732 = vrot.lane.b32.xlu1 %v717_v45, %s2721_s2  ;;  %v1054_v45 = vld [vmem:[%s3202_s5 + $0x10] sm:$0xff] }
 0xd3c   :  { %v733_v46 = vpop.permute.xlu1 %732 }
 0xd3d   :  { %2389 = vmatmul.mubr.msk.f32.vlgmr.msra.gmra.mxu0 %vm293_vm2, %v733_v46  ;;  %v1053_v46 = vld [vmem:[%s3202_s5 + $0x8] sm:$0xff] }
 0xd3e   :  { %2403 = vmatpush3.msra.mxu0 %v2829_v15  ;;  %2410 = vmatprep.mubr.msk.f32.mxu0 %vm2719_vm1, %v2717_v1  ;;  %v227_v15 = vpop.f32.mrf.mxu0 }
 0xd3f   :  { %2404 = vmatprep.subr.mxu0 %v2717_v1  ;;  %v730_v52 = vadd.f32 %v2822_v7, %v227_v15  ;;  %v1052_v15 = vld [vmem:[%s3202_s5] sm:$0xff] }
 0xd40   :  { %2405 = vmatpush3.msra.mxu0 %v2834_v16  ;;  %v2988_v48 = vpop.f32.mrf.mxu0 }
 0xd41   :  { %2406 = vmatprep.subr.mxu0 %v2717_v1 }
 0xd42   :  { %2407 = vmatpush3.msra.mxu0 %v2845_v18  ;;  %v233_v49 = vpop.f32.mrf.mxu0 }
 0xd43   :  { %2408 = vmatprep.subr.mxu0 %v2717_v1  ;;  %v839_v4 = vadd.f32 %v2822_v7, %v233_v49 }
 0xd44   :  { %2409 = vmatpush3.msra.mxu0 %v2855_v19  ;;  %v2990_v50 = vpop.f32.mrf.mxu0 }
 0xd45   :  { %2424 = vmatprep.subr.mxu0 %v2717_v1 }
 0xd46   :  { %v239_v51 = vpop.f32.mrf.mxu0 }
 0xd47   :  { %v948_v27 = vadd.f32 %v2822_v7, %v239_v51 }
 0xd48   :  { %v2992_v16 = vpop.f32.mrf.mxu0 }
 0xdfd   :  { %v802_v18 = vpop.f32.mrf.mxu0 }
 0xdfe   :  { %v806_v53 = vadd.f32 %v802_v18, %v730_v52 }
 0xdff   :  { %v2390_v54 = vpop.f32.mrf.mxu0 }
 0xe00   :  { %2587 = vtanh.f32 %v806_v53 }
 0xe0d   :  { %v2588_v19 = vpop.eup %2587 }
 0xe0e   :  { %812 = vrot.lane.b32.xlu0 %v2588_v19, %s2718_s1  ;;  %v808_v55 = vmul.f32 0.5, %v2588_v19 }
 0xe10   :  { %v809_v56 = vadd.f32 0.5, %v808_v55 }
 0xe12   :  { %v810_v59 = vmul.f32 %v809_v56, %v711_v38 }
 0xe80   :  { %v813_v57 = vpop.permute.xlu0 %812 }
 0xe81   :  { %v815_v58 = vmul.f32 %v813_v57, %v809_v56 }
 0xe83   :  { %817 = vrot.lane.b32.xlu1 %v815_v58, %s2721_s2 }
 0xef5   :  { %v818_v60 = vpop.permute.xlu1 %817 }
 0xef6   :  { %v820_v61 = vadd.f32 %v818_v60, %v810_v59 }
 0xef8   :  { %2589 = vtanh.f32 %v820_v61 }
 0xf05   :  { %v2590_v62 = vpop.eup %2589 }
 0xf06   :  { %823 = vrot.lane.b32.xlu0 %v2590_v62, %s2718_s1 }
 0xf78   :  { %v824_v0 = vpop.permute.xlu0 %823 }
 0xf79   :  { %v826_v2 = vmul.f32 %v824_v0, %v809_v56  ;;  %v2192_v56 = vld [vmem:[#allocation5] ss:$0 sm:$0xff] }
 0xf7b   :  { %841 = vrot.lane.b32.xlu1 %v826_v2, %s2721_s2 }
 0xfed   :  { %v842_v3 = vpop.permute.xlu1 %841 }
 0xfee   :  { %2400 = vmatmul.mubr.msk.f32.vlgmr.msra.gmra.mxu1 %vm293_vm2, %v842_v3 }
 0xfef   :  { %2421 = vmatprep.mubr.msk.f32.mxu1 %vm2719_vm1, %v2717_v1  ;;  %2414 = vmatpush3.msra.mxu1 %v1059_v39 }
 0xff0   :  { %2415 = vmatprep.subr.mxu1 %v2717_v1 }
 0xff1   :  { %2416 = vmatpush3.msra.mxu1 %v1058_v40 }
 0xff2   :  { %2417 = vmatprep.subr.mxu1 %v2717_v1 }
 0xff3   :  { %2418 = vmatpush3.msra.mxu1 %v1057_v41 }
 0xff4   :  { %2419 = vmatprep.subr.mxu1 %v2717_v1 }
 0xff5   :  { %2420 = vmatpush3.msra.mxu1 %v1056_v42 }
 0xff6   :  { %2435 = vmatprep.subr.mxu1 %v2717_v1 }
0x10ae   :  { %v911_v5 = vpop.f32.mrf.mxu1 }
0x10af   :  { %v915_v6 = vadd.f32 %v911_v5, %v839_v4 }
0x10b0   :  { %v2401_v8 = vpop.f32.mrf.mxu1 }
0x10b1   :  { %2591 = vtanh.f32 %v915_v6 }
0x10be   :  { %v2592_v9 = vpop.eup %2591 }
0x10bf   :  { %921 = vrot.lane.b32.xlu0 %v2592_v9, %s2718_s1  ;;  %v917_v10 = vmul.f32 0.5, %v2592_v9 }
0x10c1   :  { %v918_v11 = vadd.f32 0.5, %v917_v10 }
0x10c3   :  { %v919_v14 = vmul.f32 %v918_v11, %v820_v61 }
0x1131   :  { %v922_v12 = vpop.permute.xlu0 %921 }
0x1132   :  { %v924_v13 = vmul.f32 %v922_v12, %v918_v11 }
0x1134   :  { %926 = vrot.lane.b32.xlu1 %v924_v13, %s2721_s2 }
0x11a6   :  { %v927_v17 = vpop.permute.xlu1 %926 }
0x11a7   :  { %v929_v20 = vadd.f32 %v927_v17, %v919_v14 }
0x11a9   :  { %2593 = vtanh.f32 %v929_v20 }
0x11b6   :  { %v2594_v21 = vpop.eup %2593 }
0x11b7   :  { %932 = vrot.lane.b32.xlu0 %v2594_v21, %s2718_s1 }
0x1229   :  { %v933_v22 = vpop.permute.xlu0 %932 }
0x122a   :  { %v935_v23 = vmul.f32 %v933_v22, %v918_v11 }
0x122c   :  { %950 = vrot.lane.b32.xlu1 %v935_v23, %s2721_s2 }
0x129e   :  { %v951_v26 = vpop.permute.xlu1 %950 }
0x129f   :  { %2411 = vmatmul.mubr.msk.f32.vlgmr.msra.gmra.mxu0 %vm293_vm2, %v951_v26 }
0x12a0   :  { %2432 = vmatprep.mubr.msk.f32.mxu0 %vm2719_vm1, %v2717_v1  ;;  %2425 = vmatpush3.msra.mxu0 %v1055_v43  ;;  %v1218_v43 = vld [vmem:[#allocation8 + $0x8] sm:$0xff] }
0x12a1   :  { %2426 = vmatprep.subr.mxu0 %v2717_v1 }
0x12a2   :  { %2427 = vmatpush3.msra.mxu0 %v1054_v45  ;;  %v1217_v45 = vld [vmem:[#allocation8] sm:$0xff] }
0x12a3   :  { %2428 = vmatprep.subr.mxu0 %v2717_v1 }
0x12a4   :  { %2429 = vmatpush3.msra.mxu0 %v1053_v46 }
0x12a5   :  { %2430 = vmatprep.subr.mxu0 %v2717_v1 }
0x12a6   :  { %2431 = vmatpush3.msra.mxu0 %v1052_v15 }
0x12a7   :  { %2446 = vmatprep.subr.mxu0 %v2717_v1 }
0x135f   :  { %v1020_v28 = vpop.f32.mrf.mxu0 }
0x1360   :  { %v1024_v29 = vadd.f32 %v1020_v28, %v948_v27 }
0x1361   :  { %v2412_v30 = vpop.f32.mrf.mxu0 }
0x1362   :  { %2595 = vtanh.f32 %v1024_v29 }
0x136f   :  { %v2596_v31 = vpop.eup %2595 }
0x1370   :  { %1030 = vrot.lane.b32.xlu0 %v2596_v31, %s2718_s1  ;;  %v1026_v32 = vmul.f32 0.5, %v2596_v31 }
0x1372   :  { %v1027_v33 = vadd.f32 0.5, %v1026_v32 }
0x1374   :  { %v1028_v7 = vmul.f32 %v1027_v33, %v929_v20 }
0x13e2   :  { %v1031_v34 = vpop.permute.xlu0 %1030 }
0x13e3   :  { %v1033_v35 = vmul.f32 %v1031_v34, %v1027_v33 }
0x13e5   :  { %1035 = vrot.lane.b32.xlu1 %v1033_v35, %s2721_s2 }
0x13e9   :  { %278 = vrot.lane.b32.xlu1 %v2883_v24, %s2720_s3 }
0x13ed   :  { %283 = vrot.lane.b32.xlu1 %v2906_v44, %s2718_s1 }
0x13f1   :  { %397 = vrot.lane.b32.xlu1 %v2929_v63, %s2718_s1 }
0x13f5   :  { %506 = vrot.lane.b32.xlu1 %v2952_v25, %s2718_s1 }
0x13f9   :  { %615 = vrot.lane.b32.xlu1 %v2986_v47, %s2718_s1 }
0x13fd   :  { %724 = vrot.lane.b32.xlu1 %v2988_v48, %s2718_s1 }
0x1401   :  { %833 = vrot.lane.b32.xlu1 %v2990_v50, %s2718_s1 }
0x1405   :  { %1045 = vrot.lane.b32.xlu1 %v2992_v16, %s2720_s3 }
0x1457   :  { %v1036_v36 = vpop.permute.xlu1 %1035 }
0x1458   :  { %v1038_v37 = vadd.f32 %v1036_v36, %v1028_v7 }
0x145a   :  { %2597 = vtanh.f32 %v1038_v37 }
0x145b   :  { %v279_v49 = vpop.permute.xlu1 %278 }
0x145c   :  { %v281_v60 = vadd.f32 %v2192_v56, %v279_v49 }
0x145f   :  { %v284_v51 = vpop.permute.xlu1 %283 }
0x1460   :  { %v286_v0 = vadd.f32 %v284_v51, %v281_v60  ;;  %v2203_v51 = vld [vmem:[%s3204_s7] ss:$0 sm:$0xff] }
0x1462   :  { %v287_v9 = vmax.f32 %v286_v0, 0.0  ;;  %v1392_v0 = vld [vmem:[#allocation8 + $0x50] sm:$0xff] }
0x1463   :  { %v398_v52 = vpop.permute.xlu1 %397 }
0x1464   :  { %v288_v20 = vmax.f32 %v287_v9, 0.0 }
0x1467   :  { %v2598_v38 = vpop.eup %2597  ;;  %v507_v18 = vpop.permute.xlu1 %506 }
0x1468   :  { %1041 = vrot.lane.b32.xlu0 %v2598_v38, %s2718_s1 }
0x146b   :  { %v616_v19 = vpop.permute.xlu1 %615 }
0x146c   :  { %391 = vrot.lane.b32.xlu0 %v2906_v44, %s2720_s3 }
0x1470   :  { %500 = vrot.lane.b32.xlu0 %v2929_v63, %s2720_s3 }
0x1474   :  { %609 = vrot.lane.b32.xlu0 %v2952_v25, %s2720_s3 }
0x1478   :  { %718 = vrot.lane.b32.xlu0 %v2986_v47, %s2720_s3 }
0x147c   :  { %827 = vrot.lane.b32.xlu0 %v2988_v48, %s2720_s3 }
0x1480   :  { %936 = vrot.lane.b32.xlu0 %v2990_v50, %s2720_s3 }
0x1484   :  { %942 = vrot.lane.b32.xlu0 %v2992_v16, %s2718_s1  ;;  %v725_v16 = vpop.permute.xlu1 %724 }
0x1488   :  { %v834_v4 = vpop.permute.xlu1 %833 }
0x14da   :  { %v1042_v53 = vpop.permute.xlu0 %1041 }
0x14db   :  { %v1044_v54 = vmul.f32 %v1042_v53, %v1027_v33 }
0x14dd   :  { %1134 = vrot.lane.b32.xlu0 %v1044_v54, %s2721_s2 }
0x14de   :  { %v392_v55 = vpop.permute.xlu0 %391 }
0x14df   :  { %v394_v57 = vadd.f32 %v2192_v56, %v392_v55  ;;  %v1305_v55 = vld [vmem:[#allocation8 + $0x30] sm:$0xff] }
0x14e1   :  { %v395_v61 = vadd.f32 %v394_v57, %v2883_v24  ;;  %v1046_v24 = vpop.permute.xlu1 %1045  ;;  %v1303_v57 = vld [vmem:[#allocation8 + $0x20] sm:$0xff] }
0x14e2   :  { %v501_v58 = vpop.permute.xlu0 %500  ;;  %v1048_v28 = vadd.f32 %v2192_v56, %v1046_v24 }
0x14e3   :  { %v503_v59 = vadd.f32 %v2192_v56, %v501_v58  ;;  %v400_v5 = vadd.f32 %v398_v52, %v395_v61  ;;  %v2204_v58 = vld [vmem:[%s3206_s9] ss:$0 sm:$0xff] }
0x14e4   :  { %v1049_v7 = vadd.f32 %v1048_v28, %v2990_v50  ;;  %v1219_v50 = vld [vmem:[#allocation8 + $0x10] sm:$0xff] }
0x14e5   :  { %v504_v2 = vadd.f32 %v503_v59, %v2906_v44  ;;  %v401_v12 = vmax.f32 %v400_v5, 0.0 }
0x14e6   :  { %v610_v62 = vpop.permute.xlu0 %609  ;;  %v1050_v40 = vmax.f32 %v1049_v7, 0.0 }
0x14e7   :  { %v612_v3 = vadd.f32 %v2192_v56, %v610_v62  ;;  %v509_v10 = vadd.f32 %v507_v18, %v504_v2  ;;  %v402_v44 = vmax.f32 %v288_v20, %v401_v12  ;;  %v1393_v62 = vld [vmem:[#allocation8 + $0x58] sm:$0xff]  ;;  %v1391_v2 = vld [vmem:[#allocation8 + $0x48] sm:$0xff] }
0x14e8   :  { %v1478_v12 = vld [vmem:[#allocation8 + $0x68] sm:$0xff] }
0x14e9   :  { %v613_v6 = vadd.f32 %v612_v3, %v2929_v63  ;;  %v510_v21 = vmax.f32 %v509_v10, 0.0  ;;  %v1390_v3 = vld [vmem:[#allocation8 + $0x40] sm:$0xff]  ;;  %v1480_v10 = vld [vmem:[#allocation8 + $0x78] sm:$0xff] }
0x14ea   :  { %v719_v8 = vpop.permute.xlu0 %718 }
0x14eb   :  { %v721_v11 = vadd.f32 %v2192_v56, %v719_v8  ;;  %v618_v13 = vadd.f32 %v616_v19, %v613_v6  ;;  %v511_v29 = vmax.f32 %v402_v44, %v510_v21  ;;  %v1306_v19 = vld [vmem:[#allocation8 + $0x38] sm:$0xff]  ;;  %v1565_v44 = vld [vmem:[#allocation8 + $0x88] sm:$0xff] }
0x14ed   :  { %v722_v14 = vadd.f32 %v721_v11, %v2952_v25  ;;  %v619_v26 = vmax.f32 %v618_v13, 0.0  ;;  %v1479_v11 = vld [vmem:[#allocation8 + $0x70] sm:$0xff]  ;;  %v1477_v13 = vld [vmem:[#allocation8 + $0x60] sm:$0xff] }
0x14ee   :  { %v828_v17 = vpop.permute.xlu0 %827 }
0x14ef   :  { %v727_v22 = vadd.f32 %v725_v16, %v722_v14  ;;  %v830_v23 = vadd.f32 %v2192_v56, %v828_v17  ;;  %v620_v33 = vmax.f32 %v511_v29, %v619_v26  ;;  %v2210_v14 = vld [vmem:[%s3206_s9 + $0x2] ss:$0 sm:$0xff]  ;;  %v1564_v26 = vld [vmem:[#allocation8 + $0x80] sm:$0xff] }
0x14f1   :  { %v831_v27 = vadd.f32 %v830_v23, %v2986_v47  ;;  %v728_v30 = vmax.f32 %v727_v22, 0.0  ;;  %v1567_v22 = vld [vmem:[#allocation8 + $0x98] sm:$0xff]  ;;  %v1566_v23 = vld [vmem:[#allocation8 + $0x90] sm:$0xff] }
0x14f2   :  { %v937_v63 = vpop.permute.xlu0 %936 }
0x14f3   :  { %v836_v31 = vadd.f32 %v834_v4, %v831_v27  ;;  %v939_v32 = vadd.f32 %v2192_v56, %v937_v63  ;;  %v729_v36 = vmax.f32 %v620_v33, %v728_v30  ;;  %v1304_v56 = vld [vmem:[#allocation8 + $0x28] sm:$0xff]  ;;  %v2207_v4 = vld [vmem:[%s3206_s9 + $0x1] ss:$0 sm:$0xff]  ;;  %v2213_v27 = vld [vmem:[%s3206_s9 + $0x3] ss:$0 sm:$0xff] }
0x14f4   :  { %v1652_v33 = vld [vmem:[#allocation8 + $0xa8] sm:$0xff] }
0x14f5   :  { %v837_v34 = vmax.f32 %v836_v31, 0.0  ;;  %v940_v25 = vadd.f32 %v939_v32, %v2988_v48  ;;  %v1220_v48 = vld [vmem:[#allocation8 + $0x18] sm:$0xff]  ;;  %v1653_v32 = vld [vmem:[#allocation8 + $0xb0] sm:$0xff] }
0x14f6   :  { %v943_v35 = vpop.permute.xlu0 %942  ;;  %v1654_v31 = vld [vmem:[#allocation8 + $0xb8] sm:$0xff] }
0x14f7   :  { %v945_v37 = vadd.f32 %v943_v35, %v940_v25  ;;  %v838_v38 = vmax.f32 %v729_v36, %v837_v34  ;;  %v1651_v34 = vld [vmem:[#allocation8 + $0xa0] sm:$0xff]  ;;  %v2216_v25 = vld [vmem:[%s3206_s9 + $0x4] ss:$0 sm:$0xff] }
0x14f9   :  { %v946_v39 = vmax.f32 %v945_v37, 0.0 }
0x14fb   :  { %v947_v41 = vmax.f32 %v838_v38, %v946_v39  ;;  %v1741_v38 = vld [vmem:[#allocation8 + $0xd8] sm:$0xff]  ;;  %v1740_v39 = vld [vmem:[#allocation8 + $0xd0] sm:$0xff] }
0x14fd   :  { %v1051_v47 = vmax.f32 %v947_v41, %v1050_v40  ;;  %v1739_v40 = vld [vmem:[#allocation8 + $0xc8] sm:$0xff]  ;;  %v1738_v41 = vld [vmem:[#allocation8 + $0xc0] sm:$0xff] }
0x14ff   :  { %2422 = vmatmul.mubr.msk.f32.vlgmr.msra.gmra.mxu1 %vm293_vm2, %v1051_v47  ;;  %v2219_v47 = vld [vmem:[%s3206_s9 + $0x5] ss:$0 sm:$0xff] }
0x1500   :  { %2443 = vmatprep.mubr.msk.f32.mxu1 %vm2719_vm1, %v2717_v1  ;;  %2436 = vmatpush3.msra.mxu1 %v1220_v48 }
0x1501   :  { %2437 = vmatprep.subr.mxu1 %v2717_v1 }
0x1502   :  { %2438 = vmatpush3.msra.mxu1 %v1219_v50 }
0x1503   :  { %2439 = vmatprep.subr.mxu1 %v2717_v1 }
0x1504   :  { %2440 = vmatpush3.msra.mxu1 %v1218_v43 }
0x1505   :  { %2441 = vmatprep.subr.mxu1 %v2717_v1 }
0x1506   :  { %2442 = vmatpush3.msra.mxu1 %v1217_v45  ;;  %v1828_v45 = vld [vmem:[#allocation8 + $0xf8] sm:$0xff] }
0x1507   :  { %2457 = vmatprep.subr.mxu1 %v2717_v1 }
0x154f   :  { %v1135_v42 = vpop.permute.xlu0 %1134 }
0x1550   :  { %2433 = vmatmul.mubr.msk.f32.vlgmr.msra.gmra.mxu0 %vm293_vm2, %v1135_v42 }
0x1551   :  { %2454 = vmatprep.mubr.msk.f32.mxu0 %vm2719_vm1, %v2717_v1  ;;  %2447 = vmatpush3.msra.mxu0 %v1306_v19  ;;  %v1915_v19 = vld [vmem:[#allocation8 + $0x118] sm:$0xff] }
0x1552   :  { %2448 = vmatprep.subr.mxu0 %v2717_v1 }
0x1553   :  { %2449 = vmatpush3.msra.mxu0 %v1305_v55  ;;  %v1914_v55 = vld [vmem:[#allocation8 + $0x110] sm:$0xff] }
0x1554   :  { %2450 = vmatprep.subr.mxu0 %v2717_v1 }
0x1555   :  { %2451 = vmatpush3.msra.mxu0 %v1304_v56  ;;  %v1913_v56 = vld [vmem:[#allocation8 + $0x108] sm:$0xff] }
0x1556   :  { %2452 = vmatprep.subr.mxu0 %v2717_v1 }
0x1557   :  { %2453 = vmatpush3.msra.mxu0 %v1303_v57  ;;  %v1912_v57 = vld [vmem:[#allocation8 + $0x100] sm:$0xff] }
0x1558   :  { %2468 = vmatprep.subr.mxu0 %v2717_v1 }
0x15bf   :  { %v1129_v46 = vpop.f32.mrf.mxu1 }
0x15c1   :  { %v2423_v15 = vpop.f32.mrf.mxu1 }
0x15c2   :  { %v1826_v15 = vld [vmem:[#allocation8 + $0xe8] sm:$0xff] }
0x1610   :  { %v1204_v49 = vpop.f32.mrf.mxu0 }
0x1611   :  { %v1205_v52 = vadd.f32 %v1204_v49, %v1129_v46  ;;  %v1827_v46 = vld [vmem:[#allocation8 + $0xf0] sm:$0xff]  ;;  %v1825_v49 = vld [vmem:[#allocation8 + $0xe0] sm:$0xff] }
0x1612   :  { %v2434_v18 = vpop.f32.mrf.mxu0 }
0x1613   :  { %v1215_v53 = vadd.f32 %v2203_v51, %v1205_v52  ;;  %v2222_v51 = vld [vmem:[%s3206_s9 + $0x6] ss:$0 sm:$0xff] }
0x1615   :  { %2599 = vtanh.f32 %v1215_v53 }
0x1622   :  { %v2600_v54 = vpop.eup %2599 }
0x1623   :  { %2444 = vmatmul.mubr.msk.f32.vlgmr.msra.gmra.mxu1 %vm293_vm2, %v2600_v54 }
0x1624   :  { %2465 = vmatprep.mubr.msk.f32.mxu1 %vm2719_vm1, %v2717_v1  ;;  %2458 = vmatpush3.msra.mxu1 %v1393_v62  ;;  %v2002_v62 = vld [vmem:[#allocation8 + $0x138] sm:$0xff] }
0x1625   :  { %2459 = vmatprep.subr.mxu1 %v2717_v1 }
0x1626   :  { %2460 = vmatpush3.msra.mxu1 %v1392_v0  ;;  %v2001_v0 = vld [vmem:[#allocation8 + $0x130] sm:$0xff] }
0x1627   :  { %2461 = vmatprep.subr.mxu1 %v2717_v1 }
0x1628   :  { %2462 = vmatpush3.msra.mxu1 %v1391_v2  ;;  %v2000_v2 = vld [vmem:[#allocation8 + $0x128] sm:$0xff] }
0x1629   :  { %2463 = vmatprep.subr.mxu1 %v2717_v1 }
0x162a   :  { %2464 = vmatpush3.msra.mxu1 %v1390_v3  ;;  %v1999_v3 = vld [vmem:[#allocation8 + $0x120] sm:$0xff] }
0x162b   :  { %2479 = vmatprep.subr.mxu1 %v2717_v1 }
0x16e3   :  { %v1297_v16 = vpop.f32.mrf.mxu1 }
0x16e4   :  { %v1298_v59 = vadd.f32 %v2204_v58, %v1297_v16  ;;  %v2225_v58 = vld [vmem:[%s3206_s9 + $0x7] ss:$0 sm:$0xff] }
0x16e5   :  { %v2445_v60 = vpop.f32.mrf.mxu1 }
0x16e6   :  { %2601 = vtanh.f32 %v1298_v59 }
0x16f3   :  { %v2602_v61 = vpop.eup %2601 }
0x16f4   :  { %2455 = vmatmul.mubr.msk.f32.vlgmr.msra.gmra.mxu0 %vm293_vm2, %v2602_v61 }
0x16f5   :  { %2476 = vmatprep.mubr.msk.f32.mxu0 %vm2719_vm1, %v2717_v1  ;;  %2469 = vmatpush3.msra.mxu0 %v1480_v10  ;;  %v2088_v10 = vld [vmem:[%s3207_s10 + $0x18] sm:$0xff] }
0x16f6   :  { %2470 = vmatprep.subr.mxu0 %v2717_v1 }
0x16f7   :  { %2471 = vmatpush3.msra.mxu0 %v1479_v11  ;;  %v2087_v11 = vld [vmem:[%s3207_s10 + $0x10] sm:$0xff] }
0x16f8   :  { %2472 = vmatprep.subr.mxu0 %v2717_v1 }
0x16f9   :  { %2473 = vmatpush3.msra.mxu0 %v1478_v12  ;;  %v2086_v12 = vld [vmem:[%s3207_s10 + $0x8] sm:$0xff] }
0x16fa   :  { %2474 = vmatprep.subr.mxu0 %v2717_v1 }
0x16fb   :  { %2475 = vmatpush3.msra.mxu0 %v1477_v13  ;;  %v2085_v13 = vld [vmem:[%s3207_s10] sm:$0xff] }
0x16fc   :  { %2490 = vmatprep.subr.mxu0 %v2717_v1 }
0x17b4   :  { %v1384_v5 = vpop.f32.mrf.mxu0 }
0x17b5   :  { %v1385_v6 = vadd.f32 %v2207_v4, %v1384_v5  ;;  %v2228_v4 = vld [vmem:[%s3206_s9 + $0x8] ss:$0 sm:$0xff] }
0x17b6   :  { %v2456_v8 = vpop.f32.mrf.mxu0 }
0x17b7   :  { %2603 = vtanh.f32 %v1385_v6 }
0x17c4   :  { %v2604_v9 = vpop.eup %2603 }
0x17c5   :  { %2466 = vmatmul.mubr.msk.f32.vlgmr.msra.gmra.mxu1 %vm293_vm2, %v2604_v9 }
0x17c6   :  { %2487 = vmatprep.mubr.msk.f32.mxu1 %vm2719_vm1, %v2717_v1  ;;  %2480 = vmatpush3.msra.mxu1 %v1567_v22  ;;  %v2233_v22 = vld [vmem:[#allocation2] ss:$0 sm:$0xff] }
0x17c7   :  { %2481 = vmatprep.subr.mxu1 %v2717_v1 }
0x17c8   :  { %2482 = vmatpush3.msra.mxu1 %v1566_v23 }
0x17c9   :  { %2483 = vmatprep.subr.mxu1 %v2717_v1 }
0x17ca   :  { %2484 = vmatpush3.msra.mxu1 %v1565_v44 }
0x17cb   :  { %2485 = vmatprep.subr.mxu1 %v2717_v1 }
0x17cc   :  { %2486 = vmatpush3.msra.mxu1 %v1564_v26 }
0x17cd   :  { %2501 = vmatprep.subr.mxu1 %v2717_v1 }
0x1885   :  { %v1471_v17 = vpop.f32.mrf.mxu1 }
0x1886   :  { %v1472_v20 = vadd.f32 %v2210_v14, %v1471_v17  ;;  %v2231_v14 = vld [vmem:[%s3206_s9 + $0x9] ss:$0 sm:$0xff] }
0x1887   :  { %v2467_v24 = vpop.f32.mrf.mxu1 }
0x1888   :  { %2605 = vtanh.f32 %v1472_v20 }
0x1895   :  { %v2606_v21 = vpop.eup %2605 }
0x1896   :  { %2477 = vmatmul.mubr.msk.f32.vlgmr.msra.gmra.mxu0 %vm293_vm2, %v2606_v21 }
0x1897   :  { %2498 = vmatprep.mubr.msk.f32.mxu0 %vm2719_vm1, %v2717_v1  ;;  %2491 = vmatpush3.msra.mxu0 %v1654_v31 }
0x1898   :  { %2492 = vmatprep.subr.mxu0 %v2717_v1 }
0x1899   :  { %2493 = vmatpush3.msra.mxu0 %v1653_v32 }
0x189a   :  { %2494 = vmatprep.subr.mxu0 %v2717_v1 }
0x189b   :  { %2495 = vmatpush3.msra.mxu0 %v1652_v33 }
0x189c   :  { %2496 = vmatprep.subr.mxu0 %v2717_v1 }
0x189d   :  { %2497 = vmatpush3.msra.mxu0 %v1651_v34 }
0x189e   :  { %2512 = vmatprep.subr.mxu0 %v2717_v1 }
0x1956   :  { %v1558_v28 = vpop.f32.mrf.mxu0 }
0x1957   :  { %v1559_v63 = vadd.f32 %v2213_v27, %v1558_v28 }
0x1958   :  { %v2478_v29 = vpop.f32.mrf.mxu0 }
0x1959   :  { %2607 = vtanh.f32 %v1559_v63 }
0x1966   :  { %v2608_v30 = vpop.eup %2607 }
0x1967   :  { %2488 = vmatmul.mubr.msk.f32.vlgmr.msra.gmra.mxu1 %vm293_vm2, %v2608_v30 }
0x1968   :  { %2509 = vmatprep.mubr.msk.f32.mxu1 %vm2719_vm1, %v2717_v1  ;;  %2502 = vmatpush3.msra.mxu1 %v1741_v38 }
0x1969   :  { %2503 = vmatprep.subr.mxu1 %v2717_v1 }
0x196a   :  { %2504 = vmatpush3.msra.mxu1 %v1740_v39 }
0x196b   :  { %2505 = vmatprep.subr.mxu1 %v2717_v1 }
0x196c   :  { %2506 = vmatpush3.msra.mxu1 %v1739_v40 }
0x196d   :  { %2507 = vmatprep.subr.mxu1 %v2717_v1 }
0x196e   :  { %2508 = vmatpush3.msra.mxu1 %v1738_v41 }
0x196f   :  { %2523 = vmatprep.subr.mxu1 %v2717_v1 }
0x1a27   :  { %v1645_v35 = vpop.f32.mrf.mxu1 }
0x1a28   :  { %v1646_v7 = vadd.f32 %v2216_v25, %v1645_v35 }
0x1a29   :  { %v2489_v36 = vpop.f32.mrf.mxu1 }
0x1a2a   :  { %2609 = vtanh.f32 %v1646_v7 }
0x1a37   :  { %v2610_v37 = vpop.eup %2609 }
0x1a38   :  { %2499 = vmatmul.mubr.msk.f32.vlgmr.msra.gmra.mxu0 %vm293_vm2, %v2610_v37 }
0x1a39   :  { %2520 = vmatprep.mubr.msk.f32.mxu0 %vm2719_vm1, %v2717_v1  ;;  %2513 = vmatpush3.msra.mxu0 %v1828_v45 }
0x1a3a   :  { %2514 = vmatprep.subr.mxu0 %v2717_v1 }
0x1a3b   :  { %2515 = vmatpush3.msra.mxu0 %v1827_v46 }
0x1a3c   :  { %2516 = vmatprep.subr.mxu0 %v2717_v1 }
0x1a3d   :  { %2517 = vmatpush3.msra.mxu0 %v1826_v15 }
0x1a3e   :  { %2518 = vmatprep.subr.mxu0 %v2717_v1 }
0x1a3f   :  { %2519 = vmatpush3.msra.mxu0 %v1825_v49 }
0x1a40   :  { %2534 = vmatprep.subr.mxu0 %v2717_v1 }
0x1af8   :  { %v1732_v42 = vpop.f32.mrf.mxu0 }
0x1af9   :  { %v1733_v48 = vadd.f32 %v2219_v47, %v1732_v42 }
0x1afa   :  { %v2500_v50 = vpop.f32.mrf.mxu0 }
0x1afb   :  { %2611 = vtanh.f32 %v1733_v48 }
0x1b08   :  { %v2612_v43 = vpop.eup %2611 }
0x1b09   :  { %2510 = vmatmul.mubr.msk.f32.vlgmr.msra.gmra.mxu1 %vm293_vm2, %v2612_v43 }
0x1b0a   :  { %2531 = vmatprep.mubr.msk.f32.mxu1 %vm2719_vm1, %v2717_v1  ;;  %2524 = vmatpush3.msra.mxu1 %v1915_v19 }
0x1b0b   :  { %2525 = vmatprep.subr.mxu1 %v2717_v1 }
0x1b0c   :  { %2526 = vmatpush3.msra.mxu1 %v1914_v55 }
0x1b0d   :  { %2527 = vmatprep.subr.mxu1 %v2717_v1 }
0x1b0e   :  { %2528 = vmatpush3.msra.mxu1 %v1913_v56 }
0x1b0f   :  { %2529 = vmatprep.subr.mxu1 %v2717_v1 }
0x1b10   :  { %2530 = vmatpush3.msra.mxu1 %v1912_v57 }
0x1b11   :  { %2545 = vmatprep.subr.mxu1 %v2717_v1 }
0x1bc9   :  { %v1819_v52 = vpop.f32.mrf.mxu1 }
0x1bca   :  { %v1820_v18 = vadd.f32 %v2222_v51, %v1819_v52 }
0x1bcb   :  { %v2511_v53 = vpop.f32.mrf.mxu1 }
0x1bcc   :  { %2613 = vtanh.f32 %v1820_v18 }
0x1bd9   :  { %v2614_v54 = vpop.eup %2613 }
0x1bda   :  { %2521 = vmatmul.mubr.msk.f32.vlgmr.msra.gmra.mxu0 %vm293_vm2, %v2614_v54 }
0x1bdb   :  { %2542 = vmatprep.mubr.msk.f32.mxu0 %vm2719_vm1, %v2717_v1  ;;  %2535 = vmatpush3.msra.mxu0 %v2002_v62 }
0x1bdc   :  { %2536 = vmatprep.subr.mxu0 %v2717_v1 }
0x1bdd   :  { %2537 = vmatpush3.msra.mxu0 %v2001_v0 }
0x1bde   :  { %2538 = vmatprep.subr.mxu0 %v2717_v1 }
0x1bdf   :  { %2539 = vmatpush3.msra.mxu0 %v2000_v2 }
0x1be0   :  { %2540 = vmatprep.subr.mxu0 %v2717_v1 }
0x1be1   :  { %2541 = vmatpush3.msra.mxu0 %v1999_v3 }
0x1c9a   :  { %v1906_v16 = vpop.f32.mrf.mxu0 }
0x1c9b   :  { %v1907_v59 = vadd.f32 %v2225_v58, %v1906_v16 }
0x1c9c   :  { %v2522_v60 = vpop.f32.mrf.mxu0 }
0x1c9d   :  { %2615 = vtanh.f32 %v1907_v59 }
0x1caa   :  { %v2616_v61 = vpop.eup %2615 }
0x1cab   :  { %2532 = vmatmul.mubr.msk.f32.vlgmr.msra.gmra.mxu1 %vm293_vm2, %v2616_v61 }
0x1cac   :  { %2553 = vmatprep.mubr.msk.f32.mxu1 %vm2719_vm1, %v2717_v1  ;;  %2546 = vmatpush3.msra.mxu1 %v2088_v10 }
0x1cad   :  { %2547 = vmatprep.subr.mxu1 %v2717_v1 }
0x1cae   :  { %2548 = vmatpush3.msra.mxu1 %v2087_v11 }
0x1caf   :  { %2549 = vmatprep.subr.mxu1 %v2717_v1 }
0x1cb0   :  { %2550 = vmatpush3.msra.mxu1 %v2086_v12 }
0x1cb1   :  { %2551 = vmatprep.subr.mxu1 %v2717_v1 }
0x1cb2   :  { %2552 = vmatpush3.msra.mxu1 %v2085_v13 }
0x1d6b   :  { %v1993_v5 = vpop.f32.mrf.mxu1 }
0x1d6c   :  { %v1994_v6 = vadd.f32 %v2228_v4, %v1993_v5 }
0x1d6d   :  { %v2533_v8 = vpop.f32.mrf.mxu1 }
0x1d6e   :  { %2617 = vtanh.f32 %v1994_v6 }
0x1d7b   :  { %v2618_v9 = vpop.eup %2617 }
0x1d7c   :  { %2543 = vmatmul.mubr.msk.f32.vlgmr.msra.gmra.mxu0 %vm293_vm2, %v2618_v9 }
0x1e3c   :  { %v2080_v17 = vpop.f32.mrf.mxu0 }
0x1e3d   :  { %v2081_v20 = vadd.f32 %v2231_v14, %v2080_v17 }
0x1e3e   :  { %v2544_v24 = vpop.f32.mrf.mxu0 }
0x1e3f   :  { %2619 = vtanh.f32 %v2081_v20 }
0x1e4c   :  { %v2620_v21 = vpop.eup %2619 }
0x1e4d   :  { %2554 = vmatmul.mubr.msk.f32.vlgmr.msra.gmra.mxu1 %vm293_vm2, %v2620_v21 }
0x1f0d   :  { %v2165_v23 = vpop.f32.mrf.mxu1 }
0x1f0e   :  { %v2166_v44 = vadd.f32 %v2233_v22, %v2165_v23 }
0x1f0f   :  { %v2555_v26 = vpop.f32.mrf.mxu1 }
0x1f10   :  { %v2235_v27 = vmul.f32 -1.442695, %v2166_v44 }
0x1f12   :  { %2621 = vpow2.f32 %v2235_v27 }
0x1f1f   :  { %v2622_v28 = vpop.eup %2621 }
0x1f20   :  { %v2172_v1 = vadd.f32 1.0, %v2622_v28 }
0x1f22   :  { %2623 = vrcp.f32 %v2172_v1 }
0x1f2f   :  { %v2624_v63 = vpop.eup %2623 }
0x1f30   :  { %2176 = vst.msk [vmem:[%s3209_s12] sm:$0xff] %vm2175_vm3, %v2624_v63 }
0x1f31   :  { %2181 = vsyncpa [#allocation4], 1 }
0x1f32   :  { %2182 = vsyncpa [#allocation6], 1 }
0x1f33   :  { %2183 = vsyncpa [#allocation9], 1 }

</bundles_post_ra>
